<compile_context>
chip_gen: v5e
topology: v5e:2x2
jax: 0.10.0
libtpu: 0.0.40
codegen_flags: <defaults>
</compile_context>

<pallas_src>
import jax
import jax.numpy as jnp
from jax.experimental import pallas as pl
from jax.experimental.pallas import tpu as pltpu

BN_EPS = 1e-5
LANE = 128


# ----------------------------------------------------------------------------
# Pallas kernels
# ----------------------------------------------------------------------------
def _conv_block_kernel(p_ref, w_ref, b_ref, o_ref):
    """(im2col-conv as matmul) + bias + ReLU.  BN scale pre-folded into w/b;
    BN shift is zero for fresh eval-mode stats, so no affine epilogue."""
    y = jnp.dot(p_ref[...], w_ref[...], preferred_element_type=jnp.float32)
    o_ref[...] = jnp.maximum(y + b_ref[...], 0.0)


def conv_block(patches, w, b, *, tm_max=2048):
    """patches: (M, Kpad); w: (Kpad, 128); b: (1, 128) -> (M, 128).

    M is tiled (lane-dense 128-wide output blocks, weights stay VMEM-resident
    across grid steps); grid axis is 'parallel' for megacore sharding."""
    M, K = patches.shape
    Cout = w.shape[1]
    TM = M if M <= tm_max else tm_max      # TM == M (full dim) or a mult-of-8 tile
    grid = (pl.cdiv(M, TM),)
    return pl.pallas_call(
        _conv_block_kernel,
        out_shape=jax.ShapeDtypeStruct((M, Cout), jnp.float32),
        grid=grid,
        in_specs=[pl.BlockSpec((TM, K), lambda i: (i, 0)),
                  pl.BlockSpec((K, Cout), lambda i: (0, 0)),
                  pl.BlockSpec((1, Cout), lambda i: (0, 0))],
        out_specs=pl.BlockSpec((TM, Cout), lambda i: (i, 0)),
        compiler_params=pltpu.CompilerParams(
            dimension_semantics=("parallel",)),
    )(patches, w, b)


def _fc_kernel(x_ref, w1_ref, b1_ref, w2_ref, b2_ref, w3_ref, b3_ref, o_ref):
    """Fused Linear->ReLU(->BN folded) -> Linear->ReLU(->BN folded) -> Linear."""
    h = jnp.dot(x_ref[...], w1_ref[...], preferred_element_type=jnp.float32)
    h = jnp.maximum(h + b1_ref[...], 0.0)
    h = jnp.dot(h, w2_ref[...], preferred_element_type=jnp.float32)
    h = jnp.maximum(h + b2_ref[...], 0.0)
    o_ref[...] = (jnp.dot(h, w3_ref[...], preferred_element_type=jnp.float32)
                  + b3_ref[...])


def fc_model(x, w1, b1, w2, b2, w3, b3, *, tn_max=512):
    """x: (N, 512); weights lane-padded to 128-wide.  Batch dim tiled; the three
    weight matrices (<0.5 MB total) stay fully VMEM-resident."""
    N, K = x.shape
    Dout = w3.shape[1]
    TN = N if N <= tn_max else tn_max
    grid = (pl.cdiv(N, TN),)
    full = lambda a: pl.BlockSpec(a.shape, lambda i: (0, 0))
    return pl.pallas_call(
        _fc_kernel,
        out_shape=jax.ShapeDtypeStruct((N, Dout), jnp.float32),
        grid=grid,
        in_specs=[pl.BlockSpec((TN, K), lambda i: (i, 0)),
                  full(w1), full(b1), full(w2), full(b2), full(w3), full(b3)],
        out_specs=pl.BlockSpec((TN, Dout), lambda i: (i, 0)),
        compiler_params=pltpu.CompilerParams(
            dimension_semantics=("parallel",)),
    )(x, w1, b1, w2, b2, w3, b3)


# ----------------------------------------------------------------------------
# Plain-JAX glue: im2col, avg-pool, parameter init (with K/Cout padding and
# BatchNorm-scale folding done once, host-side)
# ----------------------------------------------------------------------------
# TODO(synk): fuse conv2 + avg_pool + the FC stack into a single pallas_call
# (post-conv1 activations are only ~4.7 KB/image) to remove the remaining
# im2col/transpose/pool HBM round trips at large batch sizes.
def im2col(x, kh, kw, k_pad):
    """x: (N,C,H,W) -> zero-padded (N*OH*OW, k_pad), PyTorch (C,KH,KW) order."""
    N, C, H, W = x.shape
    OH, OW = H - kh + 1, W - kw + 1
    cols = []
    for i in range(kh):
        for j in range(kw):
            cols.append(x[:, :, i:i + OH, j:j + OW])        # (N, C, OH, OW)
    p = jnp.stack(cols, axis=2)                             # (N, C, kh*kw, OH, OW)
    p = p.transpose(0, 3, 4, 1, 2)                          # (N, OH, OW, C, kh*kw)
    p = p.reshape(N * OH * OW, C * kh * kw)
    p = jnp.pad(p, ((0, 0), (0, k_pad - C * kh * kw)))      # lane-align K
    return p, (N, OH, OW)


def avg_pool2(x):
    """2x2 average pool, stride 2, NCHW."""
    N, C, H, W = x.shape
    return x.reshape(N, C, H // 2, 2, W // 2, 2).mean(axis=(3, 5))


def kaiming_normal(key, shape, fan_in):
    # kaiming_normal_(mode='fan_in', nonlinearity='relu') -> std = sqrt(2 / fan_in)
    return jax.random.normal(key, shape, jnp.float32) * jnp.sqrt(2.0 / fan_in)


def _pad2(a, rows, cols):
    return jnp.pad(a, ((0, rows - a.shape[0]), (0, cols - a.shape[1])))


def init_params(key):
    ks = jax.random.split(key, 5)
    # Eval-mode BN (mean=0, var=1, gamma=1, beta=0): y = x / sqrt(1+eps).
    # Positive per-channel scale -> fold into preceding weight & bias; shift=0.
    bn_scale = 1.0 / jnp.sqrt(jnp.float32(1.0 + BN_EPS))
    p = {}

    # Conv2d(3, 6, 5) + ReLU + BatchNorm2d(6)
    w = kaiming_normal(ks[0], (6, 3, 5, 5), 3 * 5 * 5).reshape(6, 75).T * bn_scale
    p["c1_w"] = _pad2(w, 128, LANE)                                   # (128, 128)
    p["c1_b"] = _pad2(jnp.full((1, 6), 0.01, jnp.float32) * bn_scale, 1, LANE)

    # Conv2d(6, 16, 5) + ReLU + BatchNorm2d(16)
    w = kaiming_normal(ks[1], (16, 6, 5, 5), 6 * 5 * 5).reshape(16, 150).T * bn_scale
    p["c2_w"] = _pad2(w, 256, LANE)                                   # (256, 128)
    p["c2_b"] = _pad2(jnp.full((1, 16), 0.01, jnp.float32) * bn_scale, 1, LANE)

    # Linear(400, 120) + ReLU + BatchNorm1d(120)
    w = kaiming_normal(ks[2], (120, 400), 400).T * bn_scale
    p["l1_w"] = _pad2(w, 512, LANE)                                   # (512, 128)
    p["l1_b"] = _pad2(jnp.full((1, 120), 0.01, jnp.float32) * bn_scale, 1, LANE)

    # Linear(120, 84) + ReLU + BatchNorm1d(84)
    w = kaiming_normal(ks[3], (84, 120), 120).T * bn_scale
    p["l2_w"] = _pad2(w, 128, LANE)                                   # (128, 128)
    p["l2_b"] = _pad2(jnp.full((1, 84), 0.01, jnp.float32) * bn_scale, 1, LANE)

    # Linear(84, 10) (no BN)
    w = kaiming_normal(ks[4], (10, 84), 84).T
    p["l3_w"] = _pad2(w, 128, LANE)                                   # (128, 128)
    p["l3_b"] = _pad2(jnp.full((1, 10), 0.01, jnp.float32), 1, LANE)
    return p


def lenet_mix_forward(params, x):
    """x: (N, 3, 32, 32) float32 NCHW -> logits (N, 10)."""
    # --- cnn_model ---
    patches, (N, OH, OW) = im2col(x, 5, 5, 128)                   # (N*784, 128)
    y = conv_block(patches, params["c1_w"], params["c1_b"])       # (N*784, 128)
    y = y[:, :6].reshape(N, OH, OW, 6).transpose(0, 3, 1, 2)      # (N, 6, 28, 28)
    y = avg_pool2(y)                                              # (N, 6, 14, 14)

    patches, (N, OH, OW) = im2col(y, 5, 5, 256)                   # (N*100, 256)
    y = conv_block(patches, params["c2_w"], params["c2_b"])       # (N*100, 128)
    y = y[:, :16].reshape(N, OH, OW, 16).transpose(0, 3, 1, 2)    # (N, 16, 10, 10)
    # Dropout2d(0.2) is identity in eval mode.
    y = avg_pool2(y)                                              # (N, 16, 5, 5)

    # --- flatten (NCHW order, same as x.view(N, -1)) ---
    flat = y.reshape(N, -1)                                       # (N, 400)
    flat = jnp.pad(flat, ((0, 0), (0, 512 - flat.shape[1])))      # (N, 512)

    # --- fc_model (single fused Pallas kernel, batch-tiled) ---
    out = fc_model(flat,
                   params["l1_w"], params["l1_b"],
                   params["l2_w"], params["l2_b"],
                   params["l3_w"], params["l3_b"])                # (N, 128)
    return out[:, :10]


if __name__ == "__main__":
    key = jax.random.PRNGKey(0)
    pkey, xkey = jax.random.split(key)
    params = init_params(pkey)
    x = jax.random.normal(xkey, (2, 3, 32, 32), jnp.float32)      # NCHW, like PyTorch

    logits = jax.jit(lenet_mix_forward)(params, x)
    jax.block_until_ready(logits)
    assert logits.shape == (2, 10) and logits.dtype == jnp.float32
    assert bool(jnp.all(jnp.isfinite(logits)))
    print("KERNEL_OK")
</pallas_src>

<mosaic_0001>
module attributes {stable_mosaic.version = 11 : i64} {
  func.func @_conv_block_kernel(%arg0: i32, %arg1: memref<1568x128xf32, #tpu.memory_space<vmem>>, %arg2: memref<128x128xf32, #tpu.memory_space<vmem>>, %arg3: memref<1x128xf32, #tpu.memory_space<vmem>>, %arg4: memref<1568x128xf32, #tpu.memory_space<vmem>>) attributes {dimension_semantics = [#tpu.dimension_semantics<parallel>], iteration_bounds = array<i64: 1>, scalar_prefetch = 0 : i64, scratch_operands = 0 : i64, tpu.core_type = #tpu.core_type<tc>, window_params = [{transform_indices = @transform_0, window_bounds = array<i64: 1568, 128>}, {pipeline_mode = #tpu.pipeline_mode<synchronous>, transform_indices = @transform_1, window_bounds = array<i64: 128, 128>}, {pipeline_mode = #tpu.pipeline_mode<synchronous>, transform_indices = @transform_2, window_bounds = array<i64: 1, 128>}, {transform_indices = @transform_3, window_bounds = array<i64: 1568, 128>}]} {
    %c0 = arith.constant 0 : index
    %c0_0 = arith.constant 0 : index
    %0 = vector.load %arg1[%c0, %c0_0] : memref<1568x128xf32, #tpu.memory_space<vmem>>, vector<1568x128xf32>
    %c0_1 = arith.constant 0 : index
    %c0_2 = arith.constant 0 : index
    %1 = vector.load %arg2[%c0_1, %c0_2] : memref<128x128xf32, #tpu.memory_space<vmem>>, vector<128x128xf32>
    %cst = arith.constant dense<0.000000e+00> : vector<1568x128xf32>
    %2 = tpu.matmul %0, %1, %cst {dimension_numbers = #tpu.dot_dimension_numbers<[1], [0], [0], [1], [0, 0, 1, 1], [], []>} : vector<1568x128xf32>, vector<128x128xf32>, vector<1568x128xf32> -> vector<1568x128xf32>
    %c0_3 = arith.constant 0 : index
    %c0_4 = arith.constant 0 : index
    %3 = vector.load %arg3[%c0_3, %c0_4] : memref<1x128xf32, #tpu.memory_space<vmem>>, vector<1x128xf32>
    %4 = vector.broadcast %3 : vector<1x128xf32> to vector<1568x128xf32>
    %5 = arith.addf %2, %4 : vector<1568x128xf32>
    %cst_5 = arith.constant 0.000000e+00 : f32
    %6 = vector.broadcast %cst_5 : f32 to vector<1568x128xf32>
    %7 = arith.maximumf %5, %6 : vector<1568x128xf32>
    %c0_6 = arith.constant 0 : index
    %c0_7 = arith.constant 0 : index
    %8 = vector.load %arg4[%c0_6, %c0_7] : memref<1568x128xf32, #tpu.memory_space<vmem>>, vector<1568x128xf32>
    tpu.vector_store %arg4[%c0_6, %c0_7], %7 {strides = array<i32>} : memref<1568x128xf32, #tpu.memory_space<vmem>>, vector<1568x128xf32>,
    return
  }
  func.func @transform_0(%arg0: i32) -> (i32, i32) {
    %c0_i32 = arith.constant 0 : i32
    %c0_i32_0 = arith.constant 0 : i32
    return %arg0, %c0_i32 : i32, i32
  }
  func.func @transform_1(%arg0: i32) -> (i32, i32) {
    %c0_i32 = arith.constant 0 : i32
    %c0_i32_0 = arith.constant 0 : i32
    %c0_i32_1 = arith.constant 0 : i32
    return %c0_i32, %c0_i32_0 : i32, i32
  }
  func.func @transform_2(%arg0: i32) -> (i32, i32) {
    %c0_i32 = arith.constant 0 : i32
    %c0_i32_0 = arith.constant 0 : i32
    %c0_i32_1 = arith.constant 0 : i32
    return %c0_i32, %c0_i32_0 : i32, i32
  }
  func.func @transform_3(%arg0: i32) -> (i32, i32) {
    %c0_i32 = arith.constant 0 : i32
    %c0_i32_0 = arith.constant 0 : i32
    return %arg0, %c0_i32 : i32, i32
  }
}

module attributes {stable_mosaic.version = 11 : i64} {
  func.func @_conv_block_kernel(%arg0: i32, %arg1: memref<200x256xf32, #tpu.memory_space<vmem>>, %arg2: memref<256x128xf32, #tpu.memory_space<vmem>>, %arg3: memref<1x128xf32, #tpu.memory_space<vmem>>, %arg4: memref<200x128xf32, #tpu.memory_space<vmem>>) attributes {dimension_semantics = [#tpu.dimension_semantics<parallel>], iteration_bounds = array<i64: 1>, scalar_prefetch = 0 : i64, scratch_operands = 0 : i64, tpu.core_type = #tpu.core_type<tc>, window_params = [{transform_indices = @transform_0, window_bounds = array<i64: 200, 256>}, {pipeline_mode = #tpu.pipeline_mode<synchronous>, transform_indices = @transform_1, window_bounds = array<i64: 256, 128>}, {pipeline_mode = #tpu.pipeline_mode<synchronous>, transform_indices = @transform_2, window_bounds = array<i64: 1, 128>}, {transform_indices = @transform_3, window_bounds = array<i64: 200, 128>}]} {
    %c0 = arith.constant 0 : index
    %c0_0 = arith.constant 0 : index
    %0 = vector.load %arg1[%c0, %c0_0] : memref<200x256xf32, #tpu.memory_space<vmem>>, vector<200x256xf32>
    %c0_1 = arith.constant 0 : index
    %c0_2 = arith.constant 0 : index
    %1 = vector.load %arg2[%c0_1, %c0_2] : memref<256x128xf32, #tpu.memory_space<vmem>>, vector<256x128xf32>
    %cst = arith.constant dense<0.000000e+00> : vector<200x128xf32>
    %2 = tpu.matmul %0, %1, %cst {dimension_numbers = #tpu.dot_dimension_numbers<[1], [0], [0], [1], [0, 0, 1, 1], [], []>} : vector<200x256xf32>, vector<256x128xf32>, vector<200x128xf32> -> vector<200x128xf32>
    %c0_3 = arith.constant 0 : index
    %c0_4 = arith.constant 0 : index
    %3 = vector.load %arg3[%c0_3, %c0_4] : memref<1x128xf32, #tpu.memory_space<vmem>>, vector<1x128xf32>
    %4 = vector.broadcast %3 : vector<1x128xf32> to vector<200x128xf32>
    %5 = arith.addf %2, %4 : vector<200x128xf32>
    %cst_5 = arith.constant 0.000000e+00 : f32
    %6 = vector.broadcast %cst_5 : f32 to vector<200x128xf32>
    %7 = arith.maximumf %5, %6 : vector<200x128xf32>
    %c0_6 = arith.constant 0 : index
    %c0_7 = arith.constant 0 : index
    %8 = vector.load %arg4[%c0_6, %c0_7] : memref<200x128xf32, #tpu.memory_space<vmem>>, vector<200x128xf32>
    tpu.vector_store %arg4[%c0_6, %c0_7], %7 {strides = array<i32>} : memref<200x128xf32, #tpu.memory_space<vmem>>, vector<200x128xf32>,
    return
  }
  func.func @transform_0(%arg0: i32) -> (i32, i32) {
    %c0_i32 = arith.constant 0 : i32
    %c0_i32_0 = arith.constant 0 : i32
    return %arg0, %c0_i32 : i32, i32
  }
  func.func @transform_1(%arg0: i32) -> (i32, i32) {
    %c0_i32 = arith.constant 0 : i32
    %c0_i32_0 = arith.constant 0 : i32
    %c0_i32_1 = arith.constant 0 : i32
    return %c0_i32, %c0_i32_0 : i32, i32
  }
  func.func @transform_2(%arg0: i32) -> (i32, i32) {
    %c0_i32 = arith.constant 0 : i32
    %c0_i32_0 = arith.constant 0 : i32
    %c0_i32_1 = arith.constant 0 : i32
    return %c0_i32, %c0_i32_0 : i32, i32
  }
  func.func @transform_3(%arg0: i32) -> (i32, i32) {
    %c0_i32 = arith.constant 0 : i32
    %c0_i32_0 = arith.constant 0 : i32
    return %arg0, %c0_i32 : i32, i32
  }
}

module attributes {stable_mosaic.version = 11 : i64} {
  func.func @_fc_kernel(%arg0: i32, %arg1: memref<2x512xf32, #tpu.memory_space<vmem>>, %arg2: memref<512x128xf32, #tpu.memory_space<vmem>>, %arg3: memref<1x128xf32, #tpu.memory_space<vmem>>, %arg4: memref<128x128xf32, #tpu.memory_space<vmem>>, %arg5: memref<1x128xf32, #tpu.memory_space<vmem>>, %arg6: memref<128x128xf32, #tpu.memory_space<vmem>>, %arg7: memref<1x128xf32, #tpu.memory_space<vmem>>, %arg8: memref<2x128xf32, #tpu.memory_space<vmem>>) attributes {dimension_semantics = [#tpu.dimension_semantics<parallel>], iteration_bounds = array<i64: 1>, scalar_prefetch = 0 : i64, scratch_operands = 0 : i64, tpu.core_type = #tpu.core_type<tc>, window_params = [{transform_indices = @transform_0, window_bounds = array<i64: 2, 512>}, {pipeline_mode = #tpu.pipeline_mode<synchronous>, transform_indices = @transform_1, window_bounds = array<i64: 512, 128>}, {pipeline_mode = #tpu.pipeline_mode<synchronous>, transform_indices = @transform_2, window_bounds = array<i64: 1, 128>}, {pipeline_mode = #tpu.pipeline_mode<synchronous>, transform_indices = @transform_3, window_bounds = array<i64: 128, 128>}, {pipeline_mode = #tpu.pipeline_mode<synchronous>, transform_indices = @transform_4, window_bounds = array<i64: 1, 128>}, {pipeline_mode = #tpu.pipeline_mode<synchronous>, transform_indices = @transform_5, window_bounds = array<i64: 128, 128>}, {pipeline_mode = #tpu.pipeline_mode<synchronous>, transform_indices = @transform_6, window_bounds = array<i64: 1, 128>}, {transform_indices = @transform_7, window_bounds = array<i64: 2, 128>}]} {
    %c0 = arith.constant 0 : index
    %c0_0 = arith.constant 0 : index
    %0 = vector.load %arg1[%c0, %c0_0] : memref<2x512xf32, #tpu.memory_space<vmem>>, vector<2x512xf32>
    %c0_1 = arith.constant 0 : index
    %c0_2 = arith.constant 0 : index
    %1 = vector.load %arg2[%c0_1, %c0_2] : memref<512x128xf32, #tpu.memory_space<vmem>>, vector<512x128xf32>
    %cst = arith.constant dense<0.000000e+00> : vector<2x128xf32>
    %2 = tpu.matmul %0, %1, %cst {dimension_numbers = #tpu.dot_dimension_numbers<[1], [0], [0], [1], [0, 0, 1, 1], [], []>} : vector<2x512xf32>, vector<512x128xf32>, vector<2x128xf32> -> vector<2x128xf32>
    %c0_3 = arith.constant 0 : index
    %c0_4 = arith.constant 0 : index
    %3 = vector.load %arg3[%c0_3, %c0_4] : memref<1x128xf32, #tpu.memory_space<vmem>>, vector<1x128xf32>
    %4 = vector.broadcast %3 : vector<1x128xf32> to vector<2x128xf32>
    %5 = arith.addf %2, %4 : vector<2x128xf32>
    %cst_5 = arith.constant 0.000000e+00 : f32
    %6 = vector.broadcast %cst_5 : f32 to vector<2x128xf32>
    %7 = arith.maximumf %5, %6 : vector<2x128xf32>
    %c0_6 = arith.constant 0 : index
    %c0_7 = arith.constant 0 : index
    %8 = vector.load %arg4[%c0_6, %c0_7] : memref<128x128xf32, #tpu.memory_space<vmem>>, vector<128x128xf32>
    %cst_8 = arith.constant dense<0.000000e+00> : vector<2x128xf32>
    %9 = tpu.matmul %7, %8, %cst_8 {dimension_numbers = #tpu.dot_dimension_numbers<[1], [0], [0], [1], [0, 0, 1, 1], [], []>} : vector<2x128xf32>, vector<128x128xf32>, vector<2x128xf32> -> vector<2x128xf32>
    %c0_9 = arith.constant 0 : index
    %c0_10 = arith.constant 0 : index
    %10 = vector.load %arg5[%c0_9, %c0_10] : memref<1x128xf32, #tpu.memory_space<vmem>>, vector<1x128xf32>
    %11 = vector.broadcast %10 : vector<1x128xf32> to vector<2x128xf32>
    %12 = arith.addf %9, %11 : vector<2x128xf32>
    %cst_11 = arith.constant 0.000000e+00 : f32
    %13 = vector.broadcast %cst_11 : f32 to vector<2x128xf32>
    %14 = arith.maximumf %12, %13 : vector<2x128xf32>
    %c0_12 = arith.constant 0 : index
    %c0_13 = arith.constant 0 : index
    %15 = vector.load %arg6[%c0_12, %c0_13] : memref<128x128xf32, #tpu.memory_space<vmem>>, vector<128x128xf32>
    %cst_14 = arith.constant dense<0.000000e+00> : vector<2x128xf32>
    %16 = tpu.matmul %14, %15, %cst_14 {dimension_numbers = #tpu.dot_dimension_numbers<[1], [0], [0], [1], [0, 0, 1, 1], [], []>} : vector<2x128xf32>, vector<128x128xf32>, vector<2x128xf32> -> vector<2x128xf32>
    %c0_15 = arith.constant 0 : index
    %c0_16 = arith.constant 0 : index
    %17 = vector.load %arg7[%c0_15, %c0_16] : memref<1x128xf32, #tpu.memory_space<vmem>>, vector<1x128xf32>
    %18 = vector.broadcast %17 : vector<1x128xf32> to vector<2x128xf32>
    %19 = arith.addf %16, %18 : vector<2x128xf32>
    %c0_17 = arith.constant 0 : index
    %c0_18 = arith.constant 0 : index
    %20 = vector.load %arg8[%c0_17, %c0_18] : memref<2x128xf32, #tpu.memory_space<vmem>>, vector<2x128xf32>
    tpu.vector_store %arg8[%c0_17, %c0_18], %19 {strides = array<i32>} : memref<2x128xf32, #tpu.memory_space<vmem>>, vector<2x128xf32>,
    return
  }
  func.func @transform_0(%arg0: i32) -> (i32, i32) {
    %c0_i32 = arith.constant 0 : i32
    %c0_i32_0 = arith.constant 0 : i32
    return %arg0, %c0_i32 : i32, i32
  }
  func.func @transform_1(%arg0: i32) -> (i32, i32) {
    %c0_i32 = arith.constant 0 : i32
    %c0_i32_0 = arith.constant 0 : i32
    %c0_i32_1 = arith.constant 0 : i32
    return %c0_i32, %c0_i32_0 : i32, i32
  }
  func.func @transform_2(%arg0: i32) -> (i32, i32) {
    %c0_i32 = arith.constant 0 : i32
    %c0_i32_0 = arith.constant 0 : i32
    %c0_i32_1 = arith.constant 0 : i32
    return %c0_i32, %c0_i32_0 : i32, i32
  }
  func.func @transform_3(%arg0: i32) -> (i32, i32) {
    %c0_i32 = arith.constant 0 : i32
    %c0_i32_0 = arith.constant 0 : i32
    %c0_i32_1 = arith.constant 0 : i32
    return %c0_i32, %c0_i32_0 : i32, i32
  }
  func.func @transform_4(%arg0: i32) -> (i32, i32) {
    %c0_i32 = arith.constant 0 : i32
    %c0_i32_0 = arith.constant 0 : i32
    %c0_i32_1 = arith.constant 0 : i32
    return %c0_i32, %c0_i32_0 : i32, i32
  }
  func.func @transform_5(%arg0: i32) -> (i32, i32) {
    %c0_i32 = arith.constant 0 : i32
    %c0_i32_0 = arith.constant 0 : i32
    %c0_i32_1 = arith.constant 0 : i32
    return %c0_i32, %c0_i32_0 : i32, i32
  }
  func.func @transform_6(%arg0: i32) -> (i32, i32) {
    %c0_i32 = arith.constant 0 : i32
    %c0_i32_0 = arith.constant 0 : i32
    %c0_i32_1 = arith.constant 0 : i32
    return %c0_i32, %c0_i32_0 : i32, i32
  }
  func.func @transform_7(%arg0: i32) -> (i32, i32) {
    %c0_i32 = arith.constant 0 : i32
    %c0_i32_0 = arith.constant 0 : i32
    return %arg0, %c0_i32 : i32, i32
  }
}

</mosaic_0001>

<bundles_post_ra>
// kernel: lenet_mix_forward.3
= control target key start
LH: loop header
LB: loop body
LE: loop exit
PB: predicated region body
PF: predicated region fallthrough
CT: control target
= control target key end

     0   :  { %s2729_s1 = inlined_call_operand.vmem [shape: f32[128,128], index: 1, kind: input, shape index: {}]   ;;  %s2730_s0 = inlined_call_operand.vmem [shape: f32[1568,128], index: 0, kind: input, shape index: {}]   ;;  %s2731_s2 = inlined_call_operand.vmem [shape: f32[1,128], index: 2, kind: input, shape index: {}]   ;;  %s2732_s3 = inlined_call_operand.vmem [shape: f32[1568,128], index: 3, kind: output, shape index: {}]  }
   0x1   :  { %v225_v0 = vld [vmem:[%s2729_s1 + $0x78] sm:$0xff]  ;;  %v224_v1 = vld [vmem:[%s2729_s1 + $0x70] sm:$0xff]  ;;  %v223_v2 = vld [vmem:[%s2729_s1 + $0x68] sm:$0xff] }
   0x2   :  { %1232 = vmatpush.msra.mxu2 %v225_v0  ;;  %1233 = vmatpush.msra.mxu3 %v225_v0  ;;  %v222_v3 = vld [vmem:[%s2729_s1 + $0x60] sm:$0xff]  ;;  %v221_v4 = vld [vmem:[%s2729_s1 + $0x58] sm:$0xff]  ;;  %v220_v5 = vld [vmem:[%s2729_s1 + $0x50] sm:$0xff] }
   0x3   :  { %230 = vmatpush.msra.mxu0 %v225_v0  ;;  %1231 = vmatpush.msra.mxu1 %v225_v0  ;;  %v219_v6 = vld [vmem:[%s2729_s1 + $0x48] sm:$0xff]  ;;  %v218_v7 = vld [vmem:[%s2729_s1 + $0x40] sm:$0xff]  ;;  %v217_v8 = vld [vmem:[%s2729_s1 + $0x38] sm:$0xff] }
   0x4   :  { %1235 = vmatpush.msra.mxu2 %v224_v1  ;;  %1236 = vmatpush.msra.mxu3 %v224_v1  ;;  %v216_v9 = vld [vmem:[%s2729_s1 + $0x30] sm:$0xff]  ;;  %v215_v10 = vld [vmem:[%s2729_s1 + $0x28] sm:$0xff]  ;;  %v214_v11 = vld [vmem:[%s2729_s1 + $0x20] sm:$0xff] }
   0x5   :  { %231 = vmatpush.msra.mxu0 %v224_v1  ;;  %1234 = vmatpush.msra.mxu1 %v224_v1  ;;  %v213_v12 = vld [vmem:[%s2729_s1 + $0x18] sm:$0xff]  ;;  %v212_v13 = vld [vmem:[%s2729_s1 + $0x10] sm:$0xff]  ;;  %v211_v14 = vld [vmem:[%s2729_s1 + $0x8] sm:$0xff] }
   0x6   :  { %1238 = vmatpush.msra.mxu2 %v223_v2  ;;  %1239 = vmatpush.msra.mxu3 %v223_v2  ;;  %v210_v15 = vld [vmem:[%s2729_s1] sm:$0xff]  ;;  %v112_v16 = vld [vmem:[%s2730_s0 + $0x310] sm:$0xff]  ;;  %v161_v17 = vld [vmem:[%s2730_s0 + $0x498] sm:$0xff] }
   0x7   :  { %232 = vmatpush.msra.mxu0 %v223_v2  ;;  %1237 = vmatpush.msra.mxu1 %v223_v2  ;;  %v14_v18 = vld [vmem:[%s2730_s0] sm:$0xff]  ;;  %v63_v19 = vld [vmem:[%s2730_s0 + $0x188] sm:$0xff]  ;;  %v113_v20 = vld [vmem:[%s2730_s0 + $0x318] sm:$0xff] }
   0x8   :  { %1241 = vmatpush.msra.mxu2 %v222_v3  ;;  %1242 = vmatpush.msra.mxu3 %v222_v3  ;;  %v162_v21 = vld [vmem:[%s2730_s0 + $0x4a0] sm:$0xff]  ;;  %v15_v22 = vld [vmem:[%s2730_s0 + $0x8] sm:$0xff]  ;;  %v64_v23 = vld [vmem:[%s2730_s0 + $0x190] sm:$0xff] }
   0x9   :  { %233 = vmatpush.msra.mxu0 %v222_v3  ;;  %1240 = vmatpush.msra.mxu1 %v222_v3  ;;  %v114_v24 = vld [vmem:[%s2730_s0 + $0x320] sm:$0xff]  ;;  %v163_v25 = vld [vmem:[%s2730_s0 + $0x4a8] sm:$0xff]  ;;  %v16_v26 = vld [vmem:[%s2730_s0 + $0x10] sm:$0xff] }
   0xa   :  { %1244 = vmatpush.msra.mxu2 %v221_v4  ;;  %1245 = vmatpush.msra.mxu3 %v221_v4  ;;  %v65_v27 = vld [vmem:[%s2730_s0 + $0x198] sm:$0xff]  ;;  %v115_v28 = vld [vmem:[%s2730_s0 + $0x328] sm:$0xff]  ;;  %v164_v29 = vld [vmem:[%s2730_s0 + $0x4b0] sm:$0xff] }
   0xb   :  { %234 = vmatpush.msra.mxu0 %v221_v4  ;;  %1243 = vmatpush.msra.mxu1 %v221_v4  ;;  %v17_v30 = vld [vmem:[%s2730_s0 + $0x18] sm:$0xff]  ;;  %v66_v31 = vld [vmem:[%s2730_s0 + $0x1a0] sm:$0xff]  ;;  %v116_v32 = vld [vmem:[%s2730_s0 + $0x330] sm:$0xff] }
   0xc   :  { %1247 = vmatpush.msra.mxu2 %v220_v5  ;;  %1248 = vmatpush.msra.mxu3 %v220_v5  ;;  %v165_v33 = vld [vmem:[%s2730_s0 + $0x4b8] sm:$0xff]  ;;  %v18_v34 = vld [vmem:[%s2730_s0 + $0x20] sm:$0xff]  ;;  %v67_v35 = vld [vmem:[%s2730_s0 + $0x1a8] sm:$0xff] }
   0xd   :  { %235 = vmatpush.msra.mxu0 %v220_v5  ;;  %1246 = vmatpush.msra.mxu1 %v220_v5  ;;  %v117_v36 = vld [vmem:[%s2730_s0 + $0x338] sm:$0xff]  ;;  %v166_v37 = vld [vmem:[%s2730_s0 + $0x4c0] sm:$0xff]  ;;  %v19_v38 = vld [vmem:[%s2730_s0 + $0x28] sm:$0xff] }
   0xe   :  { %1250 = vmatpush.msra.mxu2 %v219_v6  ;;  %1251 = vmatpush.msra.mxu3 %v219_v6  ;;  %v68_v39 = vld [vmem:[%s2730_s0 + $0x1b0] sm:$0xff]  ;;  %v118_v40 = vld [vmem:[%s2730_s0 + $0x340] sm:$0xff]  ;;  %v167_v41 = vld [vmem:[%s2730_s0 + $0x4c8] sm:$0xff] }
   0xf   :  { %236 = vmatpush.msra.mxu0 %v219_v6  ;;  %1249 = vmatpush.msra.mxu1 %v219_v6  ;;  %v20_v42 = vld [vmem:[%s2730_s0 + $0x30] sm:$0xff]  ;;  %v69_v43 = vld [vmem:[%s2730_s0 + $0x1b8] sm:$0xff]  ;;  %v119_v44 = vld [vmem:[%s2730_s0 + $0x348] sm:$0xff] }
  0x10   :  { %1253 = vmatpush.msra.mxu2 %v218_v7  ;;  %1254 = vmatpush.msra.mxu3 %v218_v7  ;;  %v168_v45 = vld [vmem:[%s2730_s0 + $0x4d0] sm:$0xff]  ;;  %v21_v46 = vld [vmem:[%s2730_s0 + $0x38] sm:$0xff]  ;;  %v70_v47 = vld [vmem:[%s2730_s0 + $0x1c0] sm:$0xff] }
  0x11   :  { %237 = vmatpush.msra.mxu0 %v218_v7  ;;  %1252 = vmatpush.msra.mxu1 %v218_v7  ;;  %v120_v48 = vld [vmem:[%s2730_s0 + $0x350] sm:$0xff]  ;;  %v169_v49 = vld [vmem:[%s2730_s0 + $0x4d8] sm:$0xff]  ;;  %v22_v50 = vld [vmem:[%s2730_s0 + $0x40] sm:$0xff] }
  0x12   :  { %1256 = vmatpush.msra.mxu2 %v217_v8  ;;  %1257 = vmatpush.msra.mxu3 %v217_v8  ;;  %v71_v51 = vld [vmem:[%s2730_s0 + $0x1c8] sm:$0xff]  ;;  %v121_v52 = vld [vmem:[%s2730_s0 + $0x358] sm:$0xff]  ;;  %v170_v53 = vld [vmem:[%s2730_s0 + $0x4e0] sm:$0xff] }
  0x13   :  { %238 = vmatpush.msra.mxu0 %v217_v8  ;;  %1255 = vmatpush.msra.mxu1 %v217_v8  ;;  %v23_v54 = vld [vmem:[%s2730_s0 + $0x48] sm:$0xff]  ;;  %v72_v55 = vld [vmem:[%s2730_s0 + $0x1d0] sm:$0xff]  ;;  %v122_v56 = vld [vmem:[%s2730_s0 + $0x360] sm:$0xff] }
  0x14   :  { %1259 = vmatpush.msra.mxu2 %v216_v9  ;;  %1260 = vmatpush.msra.mxu3 %v216_v9  ;;  %v171_v57 = vld [vmem:[%s2730_s0 + $0x4e8] sm:$0xff]  ;;  %v24_v58 = vld [vmem:[%s2730_s0 + $0x50] sm:$0xff]  ;;  %v73_v59 = vld [vmem:[%s2730_s0 + $0x1d8] sm:$0xff] }
  0x15   :  { %239 = vmatpush.msra.mxu0 %v216_v9  ;;  %1258 = vmatpush.msra.mxu1 %v216_v9  ;;  %v123_v60 = vld [vmem:[%s2730_s0 + $0x368] sm:$0xff]  ;;  %v172_v61 = vld [vmem:[%s2730_s0 + $0x4f0] sm:$0xff]  ;;  %v25_v62 = vld [vmem:[%s2730_s0 + $0x58] sm:$0xff] }
  0x16   :  { %1262 = vmatpush.msra.mxu2 %v215_v10  ;;  %1263 = vmatpush.msra.mxu3 %v215_v10  ;;  %v74_v63 = vld [vmem:[%s2730_s0 + $0x1e0] sm:$0xff]  ;;  %v124_v0 = vld [vmem:[%s2730_s0 + $0x370] sm:$0xff]  ;;  %v173_v1 = vld [vmem:[%s2730_s0 + $0x4f8] sm:$0xff] }
  0x17   :  { %240 = vmatpush.msra.mxu0 %v215_v10  ;;  %1261 = vmatpush.msra.mxu1 %v215_v10  ;;  %v26_v2 = vld [vmem:[%s2730_s0 + $0x60] sm:$0xff]  ;;  %v75_v3 = vld [vmem:[%s2730_s0 + $0x1e8] sm:$0xff]  ;;  %v125_v4 = vld [vmem:[%s2730_s0 + $0x378] sm:$0xff] }
  0x18   :  { %1265 = vmatpush.msra.mxu2 %v214_v11  ;;  %1266 = vmatpush.msra.mxu3 %v214_v11  ;;  %v174_v5 = vld [vmem:[%s2730_s0 + $0x500] sm:$0xff]  ;;  %v27_v6 = vld [vmem:[%s2730_s0 + $0x68] sm:$0xff]  ;;  %v76_v7 = vld [vmem:[%s2730_s0 + $0x1f0] sm:$0xff] }
  0x19   :  { %241 = vmatpush.msra.mxu0 %v214_v11  ;;  %1264 = vmatpush.msra.mxu1 %v214_v11  ;;  %v126_v8 = vld [vmem:[%s2730_s0 + $0x380] sm:$0xff]  ;;  %v175_v9 = vld [vmem:[%s2730_s0 + $0x508] sm:$0xff]  ;;  %v28_v10 = vld [vmem:[%s2730_s0 + $0x70] sm:$0xff] }
  0x1a   :  { %1268 = vmatpush.msra.mxu2 %v213_v12  ;;  %1269 = vmatpush.msra.mxu3 %v213_v12  ;;  %v77_v11 = vld [vmem:[%s2730_s0 + $0x1f8] sm:$0xff] }
  0x1b   :  { %242 = vmatpush.msra.mxu0 %v213_v12  ;;  %1267 = vmatpush.msra.mxu1 %v213_v12  ;;  %v127_v12 = vld [vmem:[%s2730_s0 + $0x388] sm:$0xff] }
  0x1c   :  { %1271 = vmatpush.msra.mxu2 %v212_v13  ;;  %1272 = vmatpush.msra.mxu3 %v212_v13 }
  0x1d   :  { %243 = vmatpush.msra.mxu0 %v212_v13  ;;  %1270 = vmatpush.msra.mxu1 %v212_v13  ;;  %v176_v13 = vld [vmem:[%s2730_s0 + $0x510] sm:$0xff] }
  0x1e   :  { %1274 = vmatpush.msra.mxu2 %v211_v14  ;;  %1275 = vmatpush.msra.mxu3 %v211_v14 }
  0x1f   :  { %244 = vmatpush.msra.mxu0 %v211_v14  ;;  %1273 = vmatpush.msra.mxu1 %v211_v14  ;;  %v29_v14 = vld [vmem:[%s2730_s0 + $0x78] sm:$0xff] }
  0x20   :  { %1277 = vmatpush.msra.mxu2 %v210_v15  ;;  %1278 = vmatpush.msra.mxu3 %v210_v15 }
  0x21   :  { %540 = vmatmul.f32.vlgmr.msra.gmra.mxu2 %v112_v16  ;;  %687 = vmatmul.f32.vlgmr.msra.gmra.mxu3 %v161_v17  ;;  %v1545_v16 = vld [vmem:[%s2731_s2] ss:$0 sm:$0xff]  ;;  %v128_v17 = vld [vmem:[%s2730_s0 + $0x390] sm:$0xff] }
  0x22   :  { %245 = vmatpush.msra.mxu0 %v210_v15  ;;  %1276 = vmatpush.msra.mxu1 %v210_v15  ;;  %v78_v15 = vld [vmem:[%s2730_s0 + $0x200] sm:$0xff] }
  0x23   :  { %246 = vmatmul.f32.vlgmr.msra.gmra.mxu0 %v14_v18  ;;  %393 = vmatmul.f32.vlgmr.msra.gmra.mxu1 %v63_v19  ;;  %v177_v18 = vld [vmem:[%s2730_s0 + $0x518] sm:$0xff] }
  0x29   :  { %543 = vmatmul.f32.gmra.mxu2 %v113_v20  ;;  %690 = vmatmul.f32.gmra.mxu3 %v162_v21  ;;  %v30_v21 = vld [vmem:[%s2730_s0 + $0x80] sm:$0xff] }
  0x2b   :  { %249 = vmatmul.f32.gmra.mxu0 %v15_v22  ;;  %396 = vmatmul.f32.gmra.mxu1 %v64_v23  ;;  %v79_v22 = vld [vmem:[%s2730_s0 + $0x208] sm:$0xff] }
  0x31   :  { %546 = vmatmul.f32.gmra.mxu2 %v114_v24  ;;  %693 = vmatmul.f32.gmra.mxu3 %v163_v25 }
  0x33   :  { %252 = vmatmul.f32.gmra.mxu0 %v16_v26  ;;  %399 = vmatmul.f32.gmra.mxu1 %v65_v27 }
  0x39   :  { %549 = vmatmul.f32.gmra.mxu2 %v115_v28  ;;  %696 = vmatmul.f32.gmra.mxu3 %v164_v29 }
  0x3b   :  { %255 = vmatmul.f32.gmra.mxu0 %v17_v30  ;;  %402 = vmatmul.f32.gmra.mxu1 %v66_v31  ;;  %v129_v31 = vld [vmem:[%s2730_s0 + $0x398] sm:$0xff] }
  0x41   :  { %552 = vmatmul.f32.gmra.mxu2 %v116_v32  ;;  %699 = vmatmul.f32.gmra.mxu3 %v165_v33  ;;  %v178_v32 = vld [vmem:[%s2730_s0 + $0x520] sm:$0xff] }
  0x43   :  { %258 = vmatmul.f32.gmra.mxu0 %v18_v34  ;;  %405 = vmatmul.f32.gmra.mxu1 %v67_v35 }
  0x49   :  { %555 = vmatmul.f32.gmra.mxu2 %v117_v36  ;;  %702 = vmatmul.f32.gmra.mxu3 %v166_v37  ;;  %v31_v37 = vld [vmem:[%s2730_s0 + $0x88] sm:$0xff] }
  0x4b   :  { %261 = vmatmul.f32.gmra.mxu0 %v19_v38  ;;  %408 = vmatmul.f32.gmra.mxu1 %v68_v39  ;;  %v80_v38 = vld [vmem:[%s2730_s0 + $0x210] sm:$0xff] }
  0x51   :  { %558 = vmatmul.f32.gmra.mxu2 %v118_v40  ;;  %705 = vmatmul.f32.gmra.mxu3 %v167_v41 }
  0x53   :  { %264 = vmatmul.f32.gmra.mxu0 %v20_v42  ;;  %411 = vmatmul.f32.gmra.mxu1 %v69_v43 }
  0x59   :  { %561 = vmatmul.f32.gmra.mxu2 %v119_v44  ;;  %708 = vmatmul.f32.gmra.mxu3 %v168_v45 }
  0x5b   :  { %267 = vmatmul.f32.gmra.mxu0 %v21_v46  ;;  %414 = vmatmul.f32.gmra.mxu1 %v70_v47  ;;  %v130_v47 = vld [vmem:[%s2730_s0 + $0x3a0] sm:$0xff] }
  0x61   :  { %564 = vmatmul.f32.gmra.mxu2 %v120_v48  ;;  %711 = vmatmul.f32.gmra.mxu3 %v169_v49  ;;  %v179_v48 = vld [vmem:[%s2730_s0 + $0x528] sm:$0xff] }
  0x63   :  { %270 = vmatmul.f32.gmra.mxu0 %v22_v50  ;;  %417 = vmatmul.f32.gmra.mxu1 %v71_v51 }
  0x69   :  { %567 = vmatmul.f32.gmra.mxu2 %v121_v52  ;;  %714 = vmatmul.f32.gmra.mxu3 %v170_v53  ;;  %v32_v53 = vld [vmem:[%s2730_s0 + $0x90] sm:$0xff] }
  0x6b   :  { %273 = vmatmul.f32.gmra.mxu0 %v23_v54  ;;  %420 = vmatmul.f32.gmra.mxu1 %v72_v55  ;;  %v81_v54 = vld [vmem:[%s2730_s0 + $0x218] sm:$0xff] }
  0x71   :  { %570 = vmatmul.f32.gmra.mxu2 %v122_v56  ;;  %717 = vmatmul.f32.gmra.mxu3 %v171_v57 }
  0x73   :  { %276 = vmatmul.f32.gmra.mxu0 %v24_v58  ;;  %423 = vmatmul.f32.gmra.mxu1 %v73_v59 }
  0x79   :  { %573 = vmatmul.f32.gmra.mxu2 %v123_v60  ;;  %720 = vmatmul.f32.gmra.mxu3 %v172_v61 }
  0x7b   :  { %279 = vmatmul.f32.gmra.mxu0 %v25_v62  ;;  %426 = vmatmul.f32.gmra.mxu1 %v74_v63  ;;  %v131_v63 = vld [vmem:[%s2730_s0 + $0x3a8] sm:$0xff] }
  0x81   :  { %576 = vmatmul.f32.gmra.mxu2 %v124_v0  ;;  %723 = vmatmul.f32.gmra.mxu3 %v173_v1  ;;  %v180_v0 = vld [vmem:[%s2730_s0 + $0x530] sm:$0xff] }
  0x83   :  { %282 = vmatmul.f32.gmra.mxu0 %v26_v2  ;;  %429 = vmatmul.f32.gmra.mxu1 %v75_v3 }
  0x89   :  { %579 = vmatmul.f32.gmra.mxu2 %v125_v4  ;;  %726 = vmatmul.f32.gmra.mxu3 %v174_v5  ;;  %v33_v5 = vld [vmem:[%s2730_s0 + $0x98] sm:$0xff] }
  0x8b   :  { %285 = vmatmul.f32.gmra.mxu0 %v27_v6  ;;  %432 = vmatmul.f32.gmra.mxu1 %v76_v7  ;;  %v82_v6 = vld [vmem:[%s2730_s0 + $0x220] sm:$0xff] }
  0x91   :  { %582 = vmatmul.f32.gmra.mxu2 %v126_v8  ;;  %729 = vmatmul.f32.gmra.mxu3 %v175_v9 }
  0x93   :  { %288 = vmatmul.f32.gmra.mxu0 %v28_v10  ;;  %435 = vmatmul.f32.gmra.mxu1 %v77_v11 }
  0x99   :  { %585 = vmatmul.f32.gmra.mxu2 %v127_v12  ;;  %732 = vmatmul.f32.gmra.mxu3 %v176_v13 }
  0x9b   :  { %291 = vmatmul.f32.gmra.mxu0 %v29_v14  ;;  %438 = vmatmul.f32.gmra.mxu1 %v78_v15  ;;  %v132_v15 = vld [vmem:[%s2730_s0 + $0x3b0] sm:$0xff] }
  0xa0   :  { %v247_v19 = vpop.f32.mrf.mxu0  ;;  %v394_v20 = vpop.f32.mrf.mxu1 }
  0xa1   :  { %588 = vmatmul.f32.gmra.mxu2 %v128_v17  ;;  %735 = vmatmul.f32.gmra.mxu3 %v177_v18  ;;  %v248_v23 = vadd.f32 %v1545_v16, %v247_v19  ;;  %v395_v24 = vadd.f32 %v1545_v16, %v394_v20  ;;  %v181_v17 = vld [vmem:[%s2730_s0 + $0x538] sm:$0xff] }
  0xa3   :  { %v835_v25 = vmax.f32 %v248_v23, 0.0  ;;  %v884_v26 = vmax.f32 %v395_v24, 0.0  ;;  %294 = vmatmul.f32.gmra.mxu0 %v30_v21  ;;  %441 = vmatmul.f32.gmra.mxu1 %v79_v22  ;;  %v34_v22 = vld [vmem:[%s2730_s0 + $0xa0] sm:$0xff]  ;;  %v83_v23 = vld [vmem:[%s2730_s0 + $0x228] sm:$0xff] }
  0xa4   :  { %v541_v27 = vpop.f32.mrf.mxu2  ;;  %v688_v28 = vpop.f32.mrf.mxu3 }
  0xa5   :  { %1031 = vst [vmem:[%s2732_s3] sm:$0xff] %v835_v25  ;;  %v542_v29 = vadd.f32 %v1545_v16, %v541_v27  ;;  %v689_v30 = vadd.f32 %v1545_v16, %v688_v28 }
  0xa6   :  { %1080 = vst [vmem:[%s2732_s3 + $0x188] sm:$0xff] %v884_v26 }
  0xa7   :  { %v933_v33 = vmax.f32 %v542_v29, 0.0  ;;  %v982_v34 = vmax.f32 %v689_v30, 0.0 }
  0xa8   :  { %v250_v35 = vpop.f32.mrf.mxu0  ;;  %v397_v36 = vpop.f32.mrf.mxu1 }
  0xa9   :  { %1129 = vst [vmem:[%s2732_s3 + $0x310] sm:$0xff] %v933_v33  ;;  %591 = vmatmul.f32.gmra.mxu2 %v129_v31  ;;  %738 = vmatmul.f32.gmra.mxu3 %v178_v32  ;;  %v251_v39 = vadd.f32 %v1545_v16, %v250_v35  ;;  %v398_v40 = vadd.f32 %v1545_v16, %v397_v36  ;;  %v133_v32 = vld [vmem:[%s2730_s0 + $0x3b8] sm:$0xff]  ;;  %v182_v33 = vld [vmem:[%s2730_s0 + $0x540] sm:$0xff] }
  0xaa   :  { %1178 = vst [vmem:[%s2732_s3 + $0x498] sm:$0xff] %v982_v34 }
  0xab   :  { %v836_v41 = vmax.f32 %v251_v39, 0.0  ;;  %v885_v42 = vmax.f32 %v398_v40, 0.0  ;;  %297 = vmatmul.f32.gmra.mxu0 %v31_v37  ;;  %444 = vmatmul.f32.gmra.mxu1 %v80_v38  ;;  %v35_v38 = vld [vmem:[%s2730_s0 + $0xa8] sm:$0xff]  ;;  %v84_v39 = vld [vmem:[%s2730_s0 + $0x230] sm:$0xff] }
  0xac   :  { %v544_v43 = vpop.f32.mrf.mxu2  ;;  %v691_v44 = vpop.f32.mrf.mxu3 }
  0xad   :  { %1032 = vst [vmem:[%s2732_s3 + $0x8] sm:$0xff] %v836_v41  ;;  %v545_v45 = vadd.f32 %v1545_v16, %v544_v43  ;;  %v692_v46 = vadd.f32 %v1545_v16, %v691_v44 }
  0xae   :  { %1081 = vst [vmem:[%s2732_s3 + $0x190] sm:$0xff] %v885_v42 }
  0xaf   :  { %v934_v49 = vmax.f32 %v545_v45, 0.0  ;;  %v983_v50 = vmax.f32 %v692_v46, 0.0 }
  0xb0   :  { %v253_v51 = vpop.f32.mrf.mxu0  ;;  %v400_v52 = vpop.f32.mrf.mxu1 }
  0xb1   :  { %1130 = vst [vmem:[%s2732_s3 + $0x318] sm:$0xff] %v934_v49  ;;  %594 = vmatmul.f32.gmra.mxu2 %v130_v47  ;;  %741 = vmatmul.f32.gmra.mxu3 %v179_v48  ;;  %v254_v55 = vadd.f32 %v1545_v16, %v253_v51  ;;  %v401_v56 = vadd.f32 %v1545_v16, %v400_v52  ;;  %v134_v48 = vld [vmem:[%s2730_s0 + $0x3c0] sm:$0xff]  ;;  %v183_v49 = vld [vmem:[%s2730_s0 + $0x548] sm:$0xff] }
  0xb2   :  { %1179 = vst [vmem:[%s2732_s3 + $0x4a0] sm:$0xff] %v983_v50 }
  0xb3   :  { %v837_v57 = vmax.f32 %v254_v55, 0.0  ;;  %v886_v58 = vmax.f32 %v401_v56, 0.0  ;;  %300 = vmatmul.f32.gmra.mxu0 %v32_v53  ;;  %447 = vmatmul.f32.gmra.mxu1 %v81_v54  ;;  %v36_v54 = vld [vmem:[%s2730_s0 + $0xb0] sm:$0xff]  ;;  %v85_v55 = vld [vmem:[%s2730_s0 + $0x238] sm:$0xff] }
  0xb4   :  { %v547_v59 = vpop.f32.mrf.mxu2  ;;  %v694_v60 = vpop.f32.mrf.mxu3 }
  0xb5   :  { %1033 = vst [vmem:[%s2732_s3 + $0x10] sm:$0xff] %v837_v57  ;;  %v548_v61 = vadd.f32 %v1545_v16, %v547_v59  ;;  %v695_v62 = vadd.f32 %v1545_v16, %v694_v60 }
  0xb6   :  { %1082 = vst [vmem:[%s2732_s3 + $0x198] sm:$0xff] %v886_v58 }
  0xb7   :  { %v935_v1 = vmax.f32 %v548_v61, 0.0  ;;  %v984_v2 = vmax.f32 %v695_v62, 0.0 }
  0xb8   :  { %v256_v3 = vpop.f32.mrf.mxu0  ;;  %v403_v4 = vpop.f32.mrf.mxu1 }
  0xb9   :  { %1131 = vst [vmem:[%s2732_s3 + $0x320] sm:$0xff] %v935_v1  ;;  %597 = vmatmul.f32.gmra.mxu2 %v131_v63  ;;  %744 = vmatmul.f32.gmra.mxu3 %v180_v0  ;;  %v257_v7 = vadd.f32 %v1545_v16, %v256_v3  ;;  %v404_v8 = vadd.f32 %v1545_v16, %v403_v4  ;;  %v135_v0 = vld [vmem:[%s2730_s0 + $0x3c8] sm:$0xff]  ;;  %v184_v1 = vld [vmem:[%s2730_s0 + $0x550] sm:$0xff] }
  0xba   :  { %1180 = vst [vmem:[%s2732_s3 + $0x4a8] sm:$0xff] %v984_v2 }
  0xbb   :  { %v838_v9 = vmax.f32 %v257_v7, 0.0  ;;  %v887_v10 = vmax.f32 %v404_v8, 0.0  ;;  %303 = vmatmul.f32.gmra.mxu0 %v33_v5  ;;  %450 = vmatmul.f32.gmra.mxu1 %v82_v6  ;;  %v37_v6 = vld [vmem:[%s2730_s0 + $0xb8] sm:$0xff]  ;;  %v86_v7 = vld [vmem:[%s2730_s0 + $0x240] sm:$0xff] }
  0xbc   :  { %v550_v11 = vpop.f32.mrf.mxu2  ;;  %v697_v12 = vpop.f32.mrf.mxu3 }
  0xbd   :  { %1034 = vst [vmem:[%s2732_s3 + $0x18] sm:$0xff] %v838_v9  ;;  %v551_v13 = vadd.f32 %v1545_v16, %v550_v11  ;;  %v698_v14 = vadd.f32 %v1545_v16, %v697_v12 }
  0xbe   :  { %1083 = vst [vmem:[%s2732_s3 + $0x1a0] sm:$0xff] %v887_v10 }
  0xbf   :  { %v936_v18 = vmax.f32 %v551_v13, 0.0  ;;  %v985_v19 = vmax.f32 %v698_v14, 0.0 }
  0xc0   :  { %v259_v20 = vpop.f32.mrf.mxu0  ;;  %v406_v21 = vpop.f32.mrf.mxu1 }
  0xc1   :  { %1132 = vst [vmem:[%s2732_s3 + $0x328] sm:$0xff] %v936_v18  ;;  %600 = vmatmul.f32.gmra.mxu2 %v132_v15  ;;  %747 = vmatmul.f32.gmra.mxu3 %v181_v17  ;;  %v260_v24 = vadd.f32 %v1545_v16, %v259_v20  ;;  %v407_v25 = vadd.f32 %v1545_v16, %v406_v21  ;;  %v136_v17 = vld [vmem:[%s2730_s0 + $0x3d0] sm:$0xff]  ;;  %v185_v18 = vld [vmem:[%s2730_s0 + $0x558] sm:$0xff] }
  0xc2   :  { %1181 = vst [vmem:[%s2732_s3 + $0x4b0] sm:$0xff] %v985_v19 }
  0xc3   :  { %v839_v26 = vmax.f32 %v260_v24, 0.0  ;;  %v888_v27 = vmax.f32 %v407_v25, 0.0  ;;  %306 = vmatmul.f32.gmra.mxu0 %v34_v22  ;;  %453 = vmatmul.f32.gmra.mxu1 %v83_v23  ;;  %v38_v23 = vld [vmem:[%s2730_s0 + $0xc0] sm:$0xff]  ;;  %v87_v24 = vld [vmem:[%s2730_s0 + $0x248] sm:$0xff] }
  0xc4   :  { %v553_v28 = vpop.f32.mrf.mxu2  ;;  %v700_v29 = vpop.f32.mrf.mxu3 }
  0xc5   :  { %1035 = vst [vmem:[%s2732_s3 + $0x20] sm:$0xff] %v839_v26  ;;  %v554_v30 = vadd.f32 %v1545_v16, %v553_v28  ;;  %v701_v31 = vadd.f32 %v1545_v16, %v700_v29 }
  0xc6   :  { %1084 = vst [vmem:[%s2732_s3 + $0x1a8] sm:$0xff] %v888_v27 }
  0xc7   :  { %v937_v34 = vmax.f32 %v554_v30, 0.0  ;;  %v986_v35 = vmax.f32 %v701_v31, 0.0 }
  0xc8   :  { %v262_v36 = vpop.f32.mrf.mxu0  ;;  %v409_v37 = vpop.f32.mrf.mxu1 }
  0xc9   :  { %1133 = vst [vmem:[%s2732_s3 + $0x330] sm:$0xff] %v937_v34  ;;  %603 = vmatmul.f32.gmra.mxu2 %v133_v32  ;;  %750 = vmatmul.f32.gmra.mxu3 %v182_v33  ;;  %v263_v40 = vadd.f32 %v1545_v16, %v262_v36  ;;  %v410_v41 = vadd.f32 %v1545_v16, %v409_v37  ;;  %v137_v33 = vld [vmem:[%s2730_s0 + $0x3d8] sm:$0xff]  ;;  %v186_v34 = vld [vmem:[%s2730_s0 + $0x560] sm:$0xff] }
  0xca   :  { %1182 = vst [vmem:[%s2732_s3 + $0x4b8] sm:$0xff] %v986_v35 }
  0xcb   :  { %v840_v42 = vmax.f32 %v263_v40, 0.0  ;;  %v889_v43 = vmax.f32 %v410_v41, 0.0  ;;  %309 = vmatmul.f32.gmra.mxu0 %v35_v38  ;;  %456 = vmatmul.f32.gmra.mxu1 %v84_v39  ;;  %v39_v39 = vld [vmem:[%s2730_s0 + $0xc8] sm:$0xff]  ;;  %v88_v40 = vld [vmem:[%s2730_s0 + $0x250] sm:$0xff] }
  0xcc   :  { %v556_v44 = vpop.f32.mrf.mxu2  ;;  %v703_v45 = vpop.f32.mrf.mxu3 }
  0xcd   :  { %1036 = vst [vmem:[%s2732_s3 + $0x28] sm:$0xff] %v840_v42  ;;  %v557_v46 = vadd.f32 %v1545_v16, %v556_v44  ;;  %v704_v47 = vadd.f32 %v1545_v16, %v703_v45 }
  0xce   :  { %1085 = vst [vmem:[%s2732_s3 + $0x1b0] sm:$0xff] %v889_v43 }
  0xcf   :  { %v938_v50 = vmax.f32 %v557_v46, 0.0  ;;  %v987_v51 = vmax.f32 %v704_v47, 0.0 }
  0xd0   :  { %v265_v52 = vpop.f32.mrf.mxu0  ;;  %v412_v53 = vpop.f32.mrf.mxu1 }
  0xd1   :  { %1134 = vst [vmem:[%s2732_s3 + $0x338] sm:$0xff] %v938_v50  ;;  %606 = vmatmul.f32.gmra.mxu2 %v134_v48  ;;  %753 = vmatmul.f32.gmra.mxu3 %v183_v49  ;;  %v266_v56 = vadd.f32 %v1545_v16, %v265_v52  ;;  %v413_v57 = vadd.f32 %v1545_v16, %v412_v53  ;;  %v138_v49 = vld [vmem:[%s2730_s0 + $0x3e0] sm:$0xff]  ;;  %v187_v50 = vld [vmem:[%s2730_s0 + $0x568] sm:$0xff] }
  0xd2   :  { %1183 = vst [vmem:[%s2732_s3 + $0x4c0] sm:$0xff] %v987_v51 }
  0xd3   :  { %v841_v58 = vmax.f32 %v266_v56, 0.0  ;;  %v890_v59 = vmax.f32 %v413_v57, 0.0  ;;  %312 = vmatmul.f32.gmra.mxu0 %v36_v54  ;;  %459 = vmatmul.f32.gmra.mxu1 %v85_v55  ;;  %v40_v55 = vld [vmem:[%s2730_s0 + $0xd0] sm:$0xff]  ;;  %v89_v56 = vld [vmem:[%s2730_s0 + $0x258] sm:$0xff] }
  0xd4   :  { %v559_v60 = vpop.f32.mrf.mxu2  ;;  %v706_v61 = vpop.f32.mrf.mxu3 }
  0xd5   :  { %1037 = vst [vmem:[%s2732_s3 + $0x30] sm:$0xff] %v841_v58  ;;  %v560_v62 = vadd.f32 %v1545_v16, %v559_v60  ;;  %v707_v63 = vadd.f32 %v1545_v16, %v706_v61 }
  0xd6   :  { %1086 = vst [vmem:[%s2732_s3 + $0x1b8] sm:$0xff] %v890_v59 }
  0xd7   :  { %v939_v2 = vmax.f32 %v560_v62, 0.0  ;;  %v988_v3 = vmax.f32 %v707_v63, 0.0 }
  0xd8   :  { %v268_v4 = vpop.f32.mrf.mxu0  ;;  %v415_v5 = vpop.f32.mrf.mxu1 }
  0xd9   :  { %1135 = vst [vmem:[%s2732_s3 + $0x340] sm:$0xff] %v939_v2  ;;  %609 = vmatmul.f32.gmra.mxu2 %v135_v0  ;;  %756 = vmatmul.f32.gmra.mxu3 %v184_v1  ;;  %v269_v8 = vadd.f32 %v1545_v16, %v268_v4  ;;  %v416_v9 = vadd.f32 %v1545_v16, %v415_v5  ;;  %v139_v1 = vld [vmem:[%s2730_s0 + $0x3e8] sm:$0xff]  ;;  %v188_v2 = vld [vmem:[%s2730_s0 + $0x570] sm:$0xff] }
  0xda   :  { %1184 = vst [vmem:[%s2732_s3 + $0x4c8] sm:$0xff] %v988_v3 }
  0xdb   :  { %v842_v10 = vmax.f32 %v269_v8, 0.0  ;;  %v891_v11 = vmax.f32 %v416_v9, 0.0  ;;  %315 = vmatmul.f32.gmra.mxu0 %v37_v6  ;;  %462 = vmatmul.f32.gmra.mxu1 %v86_v7  ;;  %v41_v7 = vld [vmem:[%s2730_s0 + $0xd8] sm:$0xff]  ;;  %v90_v8 = vld [vmem:[%s2730_s0 + $0x260] sm:$0xff] }
  0xdc   :  { %v562_v12 = vpop.f32.mrf.mxu2  ;;  %v709_v13 = vpop.f32.mrf.mxu3 }
  0xdd   :  { %1038 = vst [vmem:[%s2732_s3 + $0x38] sm:$0xff] %v842_v10  ;;  %v563_v14 = vadd.f32 %v1545_v16, %v562_v12  ;;  %v710_v15 = vadd.f32 %v1545_v16, %v709_v13 }
  0xde   :  { %1087 = vst [vmem:[%s2732_s3 + $0x1c0] sm:$0xff] %v891_v11 }
  0xdf   :  { %v940_v19 = vmax.f32 %v563_v14, 0.0  ;;  %v989_v20 = vmax.f32 %v710_v15, 0.0 }
  0xe0   :  { %v271_v21 = vpop.f32.mrf.mxu0  ;;  %v418_v22 = vpop.f32.mrf.mxu1 }
  0xe1   :  { %1136 = vst [vmem:[%s2732_s3 + $0x348] sm:$0xff] %v940_v19  ;;  %612 = vmatmul.f32.gmra.mxu2 %v136_v17  ;;  %759 = vmatmul.f32.gmra.mxu3 %v185_v18  ;;  %v272_v25 = vadd.f32 %v1545_v16, %v271_v21  ;;  %v419_v26 = vadd.f32 %v1545_v16, %v418_v22  ;;  %v140_v18 = vld [vmem:[%s2730_s0 + $0x3f0] sm:$0xff]  ;;  %v189_v19 = vld [vmem:[%s2730_s0 + $0x578] sm:$0xff] }
  0xe2   :  { %1185 = vst [vmem:[%s2732_s3 + $0x4d0] sm:$0xff] %v989_v20 }
  0xe3   :  { %v843_v27 = vmax.f32 %v272_v25, 0.0  ;;  %v892_v28 = vmax.f32 %v419_v26, 0.0  ;;  %318 = vmatmul.f32.gmra.mxu0 %v38_v23  ;;  %465 = vmatmul.f32.gmra.mxu1 %v87_v24  ;;  %v42_v24 = vld [vmem:[%s2730_s0 + $0xe0] sm:$0xff]  ;;  %v91_v25 = vld [vmem:[%s2730_s0 + $0x268] sm:$0xff] }
  0xe4   :  { %v565_v29 = vpop.f32.mrf.mxu2  ;;  %v712_v30 = vpop.f32.mrf.mxu3 }
  0xe5   :  { %1039 = vst [vmem:[%s2732_s3 + $0x40] sm:$0xff] %v843_v27  ;;  %v566_v31 = vadd.f32 %v1545_v16, %v565_v29  ;;  %v713_v32 = vadd.f32 %v1545_v16, %v712_v30 }
  0xe6   :  { %1088 = vst [vmem:[%s2732_s3 + $0x1c8] sm:$0xff] %v892_v28 }
  0xe7   :  { %v941_v35 = vmax.f32 %v566_v31, 0.0  ;;  %v990_v36 = vmax.f32 %v713_v32, 0.0 }
  0xe8   :  { %v274_v37 = vpop.f32.mrf.mxu0  ;;  %v421_v38 = vpop.f32.mrf.mxu1 }
  0xe9   :  { %1137 = vst [vmem:[%s2732_s3 + $0x350] sm:$0xff] %v941_v35  ;;  %615 = vmatmul.f32.gmra.mxu2 %v137_v33  ;;  %762 = vmatmul.f32.gmra.mxu3 %v186_v34  ;;  %v275_v41 = vadd.f32 %v1545_v16, %v274_v37  ;;  %v422_v42 = vadd.f32 %v1545_v16, %v421_v38  ;;  %v141_v34 = vld [vmem:[%s2730_s0 + $0x3f8] sm:$0xff]  ;;  %v190_v35 = vld [vmem:[%s2730_s0 + $0x580] sm:$0xff] }
  0xea   :  { %1186 = vst [vmem:[%s2732_s3 + $0x4d8] sm:$0xff] %v990_v36 }
  0xeb   :  { %v844_v43 = vmax.f32 %v275_v41, 0.0  ;;  %v893_v44 = vmax.f32 %v422_v42, 0.0  ;;  %321 = vmatmul.f32.gmra.mxu0 %v39_v39  ;;  %468 = vmatmul.f32.gmra.mxu1 %v88_v40  ;;  %v43_v40 = vld [vmem:[%s2730_s0 + $0xe8] sm:$0xff]  ;;  %v92_v41 = vld [vmem:[%s2730_s0 + $0x270] sm:$0xff] }
  0xec   :  { %v568_v45 = vpop.f32.mrf.mxu2  ;;  %v715_v46 = vpop.f32.mrf.mxu3 }
  0xed   :  { %1040 = vst [vmem:[%s2732_s3 + $0x48] sm:$0xff] %v844_v43  ;;  %v569_v47 = vadd.f32 %v1545_v16, %v568_v45  ;;  %v716_v48 = vadd.f32 %v1545_v16, %v715_v46 }
  0xee   :  { %1089 = vst [vmem:[%s2732_s3 + $0x1d0] sm:$0xff] %v893_v44 }
  0xef   :  { %v942_v51 = vmax.f32 %v569_v47, 0.0  ;;  %v991_v52 = vmax.f32 %v716_v48, 0.0 }
  0xf0   :  { %v277_v53 = vpop.f32.mrf.mxu0  ;;  %v424_v54 = vpop.f32.mrf.mxu1 }
  0xf1   :  { %1138 = vst [vmem:[%s2732_s3 + $0x358] sm:$0xff] %v942_v51  ;;  %618 = vmatmul.f32.gmra.mxu2 %v138_v49  ;;  %765 = vmatmul.f32.gmra.mxu3 %v187_v50  ;;  %v278_v57 = vadd.f32 %v1545_v16, %v277_v53  ;;  %v425_v58 = vadd.f32 %v1545_v16, %v424_v54  ;;  %v142_v50 = vld [vmem:[%s2730_s0 + $0x400] sm:$0xff]  ;;  %v191_v51 = vld [vmem:[%s2730_s0 + $0x588] sm:$0xff] }
  0xf2   :  { %1187 = vst [vmem:[%s2732_s3 + $0x4e0] sm:$0xff] %v991_v52 }
  0xf3   :  { %v845_v59 = vmax.f32 %v278_v57, 0.0  ;;  %v894_v60 = vmax.f32 %v425_v58, 0.0  ;;  %324 = vmatmul.f32.gmra.mxu0 %v40_v55  ;;  %471 = vmatmul.f32.gmra.mxu1 %v89_v56  ;;  %v44_v56 = vld [vmem:[%s2730_s0 + $0xf0] sm:$0xff]  ;;  %v93_v57 = vld [vmem:[%s2730_s0 + $0x278] sm:$0xff] }
  0xf4   :  { %v571_v61 = vpop.f32.mrf.mxu2  ;;  %v718_v62 = vpop.f32.mrf.mxu3 }
  0xf5   :  { %1041 = vst [vmem:[%s2732_s3 + $0x50] sm:$0xff] %v845_v59  ;;  %v572_v63 = vadd.f32 %v1545_v16, %v571_v61  ;;  %v719_v0 = vadd.f32 %v1545_v16, %v718_v62 }
  0xf6   :  { %1090 = vst [vmem:[%s2732_s3 + $0x1d8] sm:$0xff] %v894_v60 }
  0xf7   :  { %v943_v3 = vmax.f32 %v572_v63, 0.0  ;;  %v992_v4 = vmax.f32 %v719_v0, 0.0 }
  0xf8   :  { %v280_v5 = vpop.f32.mrf.mxu0  ;;  %v427_v6 = vpop.f32.mrf.mxu1 }
  0xf9   :  { %1139 = vst [vmem:[%s2732_s3 + $0x360] sm:$0xff] %v943_v3  ;;  %621 = vmatmul.f32.gmra.mxu2 %v139_v1  ;;  %768 = vmatmul.f32.gmra.mxu3 %v188_v2  ;;  %v281_v9 = vadd.f32 %v1545_v16, %v280_v5  ;;  %v428_v10 = vadd.f32 %v1545_v16, %v427_v6  ;;  %v143_v2 = vld [vmem:[%s2730_s0 + $0x408] sm:$0xff]  ;;  %v192_v3 = vld [vmem:[%s2730_s0 + $0x590] sm:$0xff] }
  0xfa   :  { %1188 = vst [vmem:[%s2732_s3 + $0x4e8] sm:$0xff] %v992_v4 }
  0xfb   :  { %v846_v11 = vmax.f32 %v281_v9, 0.0  ;;  %v895_v12 = vmax.f32 %v428_v10, 0.0  ;;  %327 = vmatmul.f32.gmra.mxu0 %v41_v7  ;;  %474 = vmatmul.f32.gmra.mxu1 %v90_v8  ;;  %v45_v8 = vld [vmem:[%s2730_s0 + $0xf8] sm:$0xff]  ;;  %v94_v9 = vld [vmem:[%s2730_s0 + $0x280] sm:$0xff] }
  0xfc   :  { %v574_v13 = vpop.f32.mrf.mxu2  ;;  %v721_v14 = vpop.f32.mrf.mxu3 }
  0xfd   :  { %1042 = vst [vmem:[%s2732_s3 + $0x58] sm:$0xff] %v846_v11  ;;  %v575_v15 = vadd.f32 %v1545_v16, %v574_v13  ;;  %v722_v17 = vadd.f32 %v1545_v16, %v721_v14 }
  0xfe   :  { %1091 = vst [vmem:[%s2732_s3 + $0x1e0] sm:$0xff] %v895_v12 }
  0xff   :  { %v944_v20 = vmax.f32 %v575_v15, 0.0  ;;  %v993_v21 = vmax.f32 %v722_v17, 0.0 }
 0x100   :  { %v283_v22 = vpop.f32.mrf.mxu0  ;;  %v430_v23 = vpop.f32.mrf.mxu1 }
 0x101   :  { %1140 = vst [vmem:[%s2732_s3 + $0x368] sm:$0xff] %v944_v20  ;;  %624 = vmatmul.f32.gmra.mxu2 %v140_v18  ;;  %771 = vmatmul.f32.gmra.mxu3 %v189_v19  ;;  %v284_v26 = vadd.f32 %v1545_v16, %v283_v22  ;;  %v431_v27 = vadd.f32 %v1545_v16, %v430_v23  ;;  %v144_v19 = vld [vmem:[%s2730_s0 + $0x410] sm:$0xff]  ;;  %v193_v20 = vld [vmem:[%s2730_s0 + $0x598] sm:$0xff] }
 0x102   :  { %1189 = vst [vmem:[%s2732_s3 + $0x4f0] sm:$0xff] %v993_v21 }
 0x103   :  { %v847_v28 = vmax.f32 %v284_v26, 0.0  ;;  %v896_v29 = vmax.f32 %v431_v27, 0.0  ;;  %330 = vmatmul.f32.gmra.mxu0 %v42_v24  ;;  %477 = vmatmul.f32.gmra.mxu1 %v91_v25  ;;  %v46_v25 = vld [vmem:[%s2730_s0 + $0x100] sm:$0xff]  ;;  %v95_v26 = vld [vmem:[%s2730_s0 + $0x288] sm:$0xff] }
 0x104   :  { %v577_v30 = vpop.f32.mrf.mxu2  ;;  %v724_v31 = vpop.f32.mrf.mxu3 }
 0x105   :  { %1043 = vst [vmem:[%s2732_s3 + $0x60] sm:$0xff] %v847_v28  ;;  %v578_v32 = vadd.f32 %v1545_v16, %v577_v30  ;;  %v725_v33 = vadd.f32 %v1545_v16, %v724_v31 }
 0x106   :  { %1092 = vst [vmem:[%s2732_s3 + $0x1e8] sm:$0xff] %v896_v29 }
 0x107   :  { %v945_v36 = vmax.f32 %v578_v32, 0.0  ;;  %v994_v37 = vmax.f32 %v725_v33, 0.0 }
 0x108   :  { %v286_v38 = vpop.f32.mrf.mxu0  ;;  %v433_v39 = vpop.f32.mrf.mxu1 }
 0x109   :  { %1141 = vst [vmem:[%s2732_s3 + $0x370] sm:$0xff] %v945_v36  ;;  %627 = vmatmul.f32.gmra.mxu2 %v141_v34  ;;  %774 = vmatmul.f32.gmra.mxu3 %v190_v35  ;;  %v287_v42 = vadd.f32 %v1545_v16, %v286_v38  ;;  %v434_v43 = vadd.f32 %v1545_v16, %v433_v39  ;;  %v145_v35 = vld [vmem:[%s2730_s0 + $0x418] sm:$0xff]  ;;  %v194_v36 = vld [vmem:[%s2730_s0 + $0x5a0] sm:$0xff] }
 0x10a   :  { %1190 = vst [vmem:[%s2732_s3 + $0x4f8] sm:$0xff] %v994_v37 }
 0x10b   :  { %v848_v44 = vmax.f32 %v287_v42, 0.0  ;;  %v897_v45 = vmax.f32 %v434_v43, 0.0  ;;  %333 = vmatmul.f32.gmra.mxu0 %v43_v40  ;;  %480 = vmatmul.f32.gmra.mxu1 %v92_v41  ;;  %v47_v41 = vld [vmem:[%s2730_s0 + $0x108] sm:$0xff]  ;;  %v96_v42 = vld [vmem:[%s2730_s0 + $0x290] sm:$0xff] }
 0x10c   :  { %v580_v46 = vpop.f32.mrf.mxu2  ;;  %v727_v47 = vpop.f32.mrf.mxu3 }
 0x10d   :  { %1044 = vst [vmem:[%s2732_s3 + $0x68] sm:$0xff] %v848_v44  ;;  %v581_v48 = vadd.f32 %v1545_v16, %v580_v46  ;;  %v728_v49 = vadd.f32 %v1545_v16, %v727_v47 }
 0x10e   :  { %1093 = vst [vmem:[%s2732_s3 + $0x1f0] sm:$0xff] %v897_v45 }
 0x10f   :  { %v946_v52 = vmax.f32 %v581_v48, 0.0  ;;  %v995_v53 = vmax.f32 %v728_v49, 0.0 }
 0x110   :  { %v289_v54 = vpop.f32.mrf.mxu0  ;;  %v436_v55 = vpop.f32.mrf.mxu1 }
 0x111   :  { %1142 = vst [vmem:[%s2732_s3 + $0x378] sm:$0xff] %v946_v52  ;;  %630 = vmatmul.f32.gmra.mxu2 %v142_v50  ;;  %777 = vmatmul.f32.gmra.mxu3 %v191_v51  ;;  %v290_v58 = vadd.f32 %v1545_v16, %v289_v54  ;;  %v437_v59 = vadd.f32 %v1545_v16, %v436_v55  ;;  %v146_v51 = vld [vmem:[%s2730_s0 + $0x420] sm:$0xff]  ;;  %v195_v52 = vld [vmem:[%s2730_s0 + $0x5a8] sm:$0xff] }
 0x112   :  { %1191 = vst [vmem:[%s2732_s3 + $0x500] sm:$0xff] %v995_v53 }
 0x113   :  { %v849_v60 = vmax.f32 %v290_v58, 0.0  ;;  %v898_v61 = vmax.f32 %v437_v59, 0.0  ;;  %336 = vmatmul.f32.gmra.mxu0 %v44_v56  ;;  %483 = vmatmul.f32.gmra.mxu1 %v93_v57  ;;  %v48_v57 = vld [vmem:[%s2730_s0 + $0x110] sm:$0xff]  ;;  %v97_v58 = vld [vmem:[%s2730_s0 + $0x298] sm:$0xff] }
 0x114   :  { %v583_v62 = vpop.f32.mrf.mxu2  ;;  %v730_v63 = vpop.f32.mrf.mxu3 }
 0x115   :  { %1045 = vst [vmem:[%s2732_s3 + $0x70] sm:$0xff] %v849_v60  ;;  %v584_v0 = vadd.f32 %v1545_v16, %v583_v62  ;;  %v731_v1 = vadd.f32 %v1545_v16, %v730_v63 }
 0x116   :  { %1094 = vst [vmem:[%s2732_s3 + $0x1f8] sm:$0xff] %v898_v61 }
 0x117   :  { %v947_v4 = vmax.f32 %v584_v0, 0.0  ;;  %v996_v5 = vmax.f32 %v731_v1, 0.0 }
 0x118   :  { %v292_v6 = vpop.f32.mrf.mxu0  ;;  %v439_v7 = vpop.f32.mrf.mxu1 }
 0x119   :  { %1143 = vst [vmem:[%s2732_s3 + $0x380] sm:$0xff] %v947_v4  ;;  %633 = vmatmul.f32.gmra.mxu2 %v143_v2  ;;  %780 = vmatmul.f32.gmra.mxu3 %v192_v3  ;;  %v293_v10 = vadd.f32 %v1545_v16, %v292_v6  ;;  %v440_v11 = vadd.f32 %v1545_v16, %v439_v7  ;;  %v147_v3 = vld [vmem:[%s2730_s0 + $0x428] sm:$0xff]  ;;  %v196_v4 = vld [vmem:[%s2730_s0 + $0x5b0] sm:$0xff] }
 0x11a   :  { %1192 = vst [vmem:[%s2732_s3 + $0x508] sm:$0xff] %v996_v5 }
 0x11b   :  { %v850_v12 = vmax.f32 %v293_v10, 0.0  ;;  %v899_v13 = vmax.f32 %v440_v11, 0.0  ;;  %339 = vmatmul.f32.gmra.mxu0 %v45_v8  ;;  %486 = vmatmul.f32.gmra.mxu1 %v94_v9  ;;  %v49_v9 = vld [vmem:[%s2730_s0 + $0x118] sm:$0xff]  ;;  %v98_v10 = vld [vmem:[%s2730_s0 + $0x2a0] sm:$0xff] }
 0x11c   :  { %v586_v14 = vpop.f32.mrf.mxu2  ;;  %v733_v15 = vpop.f32.mrf.mxu3 }
 0x11d   :  { %1046 = vst [vmem:[%s2732_s3 + $0x78] sm:$0xff] %v850_v12  ;;  %v587_v17 = vadd.f32 %v1545_v16, %v586_v14  ;;  %v734_v18 = vadd.f32 %v1545_v16, %v733_v15 }
 0x11e   :  { %1095 = vst [vmem:[%s2732_s3 + $0x200] sm:$0xff] %v899_v13 }
 0x11f   :  { %v948_v21 = vmax.f32 %v587_v17, 0.0  ;;  %v997_v22 = vmax.f32 %v734_v18, 0.0 }
 0x120   :  { %v295_v23 = vpop.f32.mrf.mxu0  ;;  %v442_v24 = vpop.f32.mrf.mxu1 }
 0x121   :  { %1144 = vst [vmem:[%s2732_s3 + $0x388] sm:$0xff] %v948_v21  ;;  %636 = vmatmul.f32.gmra.mxu2 %v144_v19  ;;  %783 = vmatmul.f32.gmra.mxu3 %v193_v20  ;;  %v296_v27 = vadd.f32 %v1545_v16, %v295_v23  ;;  %v443_v28 = vadd.f32 %v1545_v16, %v442_v24  ;;  %v148_v20 = vld [vmem:[%s2730_s0 + $0x430] sm:$0xff]  ;;  %v197_v21 = vld [vmem:[%s2730_s0 + $0x5b8] sm:$0xff] }
 0x122   :  { %1193 = vst [vmem:[%s2732_s3 + $0x510] sm:$0xff] %v997_v22 }
 0x123   :  { %v851_v29 = vmax.f32 %v296_v27, 0.0  ;;  %v900_v30 = vmax.f32 %v443_v28, 0.0  ;;  %342 = vmatmul.f32.gmra.mxu0 %v46_v25  ;;  %489 = vmatmul.f32.gmra.mxu1 %v95_v26  ;;  %v50_v26 = vld [vmem:[%s2730_s0 + $0x120] sm:$0xff]  ;;  %v99_v27 = vld [vmem:[%s2730_s0 + $0x2a8] sm:$0xff] }
 0x124   :  { %v589_v31 = vpop.f32.mrf.mxu2  ;;  %v736_v32 = vpop.f32.mrf.mxu3 }
 0x125   :  { %1047 = vst [vmem:[%s2732_s3 + $0x80] sm:$0xff] %v851_v29  ;;  %v590_v33 = vadd.f32 %v1545_v16, %v589_v31  ;;  %v737_v34 = vadd.f32 %v1545_v16, %v736_v32 }
 0x126   :  { %1096 = vst [vmem:[%s2732_s3 + $0x208] sm:$0xff] %v900_v30 }
 0x127   :  { %v949_v37 = vmax.f32 %v590_v33, 0.0  ;;  %v998_v38 = vmax.f32 %v737_v34, 0.0 }
 0x128   :  { %v298_v39 = vpop.f32.mrf.mxu0  ;;  %v445_v40 = vpop.f32.mrf.mxu1 }
 0x129   :  { %1145 = vst [vmem:[%s2732_s3 + $0x390] sm:$0xff] %v949_v37  ;;  %639 = vmatmul.f32.gmra.mxu2 %v145_v35  ;;  %786 = vmatmul.f32.gmra.mxu3 %v194_v36  ;;  %v299_v43 = vadd.f32 %v1545_v16, %v298_v39  ;;  %v446_v44 = vadd.f32 %v1545_v16, %v445_v40  ;;  %v149_v36 = vld [vmem:[%s2730_s0 + $0x438] sm:$0xff]  ;;  %v198_v37 = vld [vmem:[%s2730_s0 + $0x5c0] sm:$0xff] }
 0x12a   :  { %1194 = vst [vmem:[%s2732_s3 + $0x518] sm:$0xff] %v998_v38 }
 0x12b   :  { %v852_v45 = vmax.f32 %v299_v43, 0.0  ;;  %v901_v46 = vmax.f32 %v446_v44, 0.0  ;;  %345 = vmatmul.f32.gmra.mxu0 %v47_v41  ;;  %492 = vmatmul.f32.gmra.mxu1 %v96_v42  ;;  %v100_v42 = vld [vmem:[%s2730_s0 + $0x2b0] sm:$0xff]  ;;  %v2147_v43 = vld [vmem:[%s2731_s2] ss:$0 sm:$0xff] }
 0x12c   :  { %v592_v47 = vpop.f32.mrf.mxu2  ;;  %v739_v48 = vpop.f32.mrf.mxu3 }
 0x12d   :  { %1048 = vst [vmem:[%s2732_s3 + $0x88] sm:$0xff] %v852_v45  ;;  %v593_v49 = vadd.f32 %v1545_v16, %v592_v47  ;;  %v740_v50 = vadd.f32 %v1545_v16, %v739_v48 }
 0x12e   :  { %1097 = vst [vmem:[%s2732_s3 + $0x210] sm:$0xff] %v901_v46 }
 0x12f   :  { %v950_v53 = vmax.f32 %v593_v49, 0.0  ;;  %v999_v54 = vmax.f32 %v740_v50, 0.0 }
 0x130   :  { %v301_v55 = vpop.f32.mrf.mxu0  ;;  %v448_v56 = vpop.f32.mrf.mxu1 }
 0x131   :  { %1146 = vst [vmem:[%s2732_s3 + $0x398] sm:$0xff] %v950_v53  ;;  %642 = vmatmul.f32.gmra.mxu2 %v146_v51  ;;  %789 = vmatmul.f32.gmra.mxu3 %v195_v52  ;;  %v302_v59 = vadd.f32 %v1545_v16, %v301_v55  ;;  %v449_v60 = vadd.f32 %v1545_v16, %v448_v56  ;;  %v150_v52 = vld [vmem:[%s2730_s0 + $0x440] sm:$0xff]  ;;  %v199_v53 = vld [vmem:[%s2730_s0 + $0x5c8] sm:$0xff] }
 0x132   :  { %1195 = vst [vmem:[%s2732_s3 + $0x520] sm:$0xff] %v999_v54 }
 0x133   :  { %v853_v61 = vmax.f32 %v302_v59, 0.0  ;;  %v902_v62 = vmax.f32 %v449_v60, 0.0  ;;  %348 = vmatmul.f32.gmra.mxu0 %v48_v57  ;;  %495 = vmatmul.f32.gmra.mxu1 %v97_v58  ;;  %v52_v58 = vld [vmem:[%s2730_s0 + $0x130] sm:$0xff]  ;;  %v101_v59 = vld [vmem:[%s2730_s0 + $0x2b8] sm:$0xff] }
 0x134   :  { %v595_v63 = vpop.f32.mrf.mxu2  ;;  %v742_v0 = vpop.f32.mrf.mxu3 }
 0x135   :  { %1049 = vst [vmem:[%s2732_s3 + $0x90] sm:$0xff] %v853_v61  ;;  %v596_v1 = vadd.f32 %v1545_v16, %v595_v63  ;;  %v743_v2 = vadd.f32 %v1545_v16, %v742_v0 }
 0x136   :  { %1098 = vst [vmem:[%s2732_s3 + $0x218] sm:$0xff] %v902_v62 }
 0x137   :  { %v951_v5 = vmax.f32 %v596_v1, 0.0  ;;  %v1000_v6 = vmax.f32 %v743_v2, 0.0 }
 0x138   :  { %v304_v7 = vpop.f32.mrf.mxu0  ;;  %v451_v8 = vpop.f32.mrf.mxu1 }
 0x139   :  { %1147 = vst [vmem:[%s2732_s3 + $0x3a0] sm:$0xff] %v951_v5  ;;  %645 = vmatmul.f32.gmra.mxu2 %v147_v3  ;;  %792 = vmatmul.f32.gmra.mxu3 %v196_v4  ;;  %v305_v11 = vadd.f32 %v1545_v16, %v304_v7  ;;  %v452_v12 = vadd.f32 %v1545_v16, %v451_v8  ;;  %v151_v4 = vld [vmem:[%s2730_s0 + $0x448] sm:$0xff]  ;;  %v200_v5 = vld [vmem:[%s2730_s0 + $0x5d0] sm:$0xff] }
 0x13a   :  { %1196 = vst [vmem:[%s2732_s3 + $0x528] sm:$0xff] %v1000_v6 }
 0x13b   :  { %v854_v13 = vmax.f32 %v305_v11, 0.0  ;;  %v903_v14 = vmax.f32 %v452_v12, 0.0  ;;  %351 = vmatmul.f32.gmra.mxu0 %v49_v9  ;;  %498 = vmatmul.f32.gmra.mxu1 %v98_v10  ;;  %v53_v10 = vld [vmem:[%s2730_s0 + $0x138] sm:$0xff]  ;;  %v102_v11 = vld [vmem:[%s2730_s0 + $0x2c0] sm:$0xff] }
 0x13c   :  { %v598_v15 = vpop.f32.mrf.mxu2  ;;  %v745_v17 = vpop.f32.mrf.mxu3 }
 0x13d   :  { %1050 = vst [vmem:[%s2732_s3 + $0x98] sm:$0xff] %v854_v13  ;;  %v599_v18 = vadd.f32 %v1545_v16, %v598_v15  ;;  %v746_v19 = vadd.f32 %v1545_v16, %v745_v17 }
 0x13e   :  { %1099 = vst [vmem:[%s2732_s3 + $0x220] sm:$0xff] %v903_v14 }
 0x13f   :  { %v952_v22 = vmax.f32 %v599_v18, 0.0  ;;  %v1001_v23 = vmax.f32 %v746_v19, 0.0 }
 0x140   :  { %v307_v24 = vpop.f32.mrf.mxu0  ;;  %v454_v25 = vpop.f32.mrf.mxu1 }
 0x141   :  { %1148 = vst [vmem:[%s2732_s3 + $0x3a8] sm:$0xff] %v952_v22  ;;  %648 = vmatmul.f32.gmra.mxu2 %v148_v20  ;;  %795 = vmatmul.f32.gmra.mxu3 %v197_v21  ;;  %v308_v28 = vadd.f32 %v1545_v16, %v307_v24  ;;  %v455_v29 = vadd.f32 %v1545_v16, %v454_v25  ;;  %v152_v21 = vld [vmem:[%s2730_s0 + $0x450] sm:$0xff]  ;;  %v201_v22 = vld [vmem:[%s2730_s0 + $0x5d8] sm:$0xff] }
 0x142   :  { %1197 = vst [vmem:[%s2732_s3 + $0x530] sm:$0xff] %v1001_v23 }
 0x143   :  { %v855_v30 = vmax.f32 %v308_v28, 0.0  ;;  %v904_v31 = vmax.f32 %v455_v29, 0.0  ;;  %354 = vmatmul.f32.gmra.mxu0 %v50_v26  ;;  %501 = vmatmul.f32.gmra.mxu1 %v99_v27  ;;  %v54_v27 = vld [vmem:[%s2730_s0 + $0x140] sm:$0xff]  ;;  %v103_v28 = vld [vmem:[%s2730_s0 + $0x2c8] sm:$0xff] }
 0x144   :  { %v601_v32 = vpop.f32.mrf.mxu2  ;;  %v748_v33 = vpop.f32.mrf.mxu3 }
 0x145   :  { %1051 = vst [vmem:[%s2732_s3 + $0xa0] sm:$0xff] %v855_v30  ;;  %v602_v34 = vadd.f32 %v1545_v16, %v601_v32  ;;  %v749_v35 = vadd.f32 %v1545_v16, %v748_v33  ;;  %v51_v16 = vld [vmem:[%s2730_s0 + $0x128] sm:$0xff] }
 0x146   :  { %1100 = vst [vmem:[%s2732_s3 + $0x228] sm:$0xff] %v904_v31 }
 0x147   :  { %v953_v38 = vmax.f32 %v602_v34, 0.0  ;;  %v1002_v39 = vmax.f32 %v749_v35, 0.0 }
 0x148   :  { %v310_v40 = vpop.f32.mrf.mxu0  ;;  %v457_v41 = vpop.f32.mrf.mxu1 }
 0x149   :  { %1149 = vst [vmem:[%s2732_s3 + $0x3b0] sm:$0xff] %v953_v38  ;;  %651 = vmatmul.f32.gmra.mxu2 %v149_v36  ;;  %798 = vmatmul.f32.gmra.mxu3 %v198_v37  ;;  %v311_v44 = vadd.f32 %v2147_v43, %v310_v40  ;;  %v458_v45 = vadd.f32 %v2147_v43, %v457_v41  ;;  %v153_v37 = vld [vmem:[%s2730_s0 + $0x458] sm:$0xff]  ;;  %v202_v38 = vld [vmem:[%s2730_s0 + $0x5e0] sm:$0xff] }
 0x14a   :  { %1198 = vst [vmem:[%s2732_s3 + $0x538] sm:$0xff] %v1002_v39 }
 0x14b   :  { %v856_v46 = vmax.f32 %v311_v44, 0.0  ;;  %v905_v47 = vmax.f32 %v458_v45, 0.0  ;;  %357 = vmatmul.f32.gmra.mxu0 %v51_v16  ;;  %504 = vmatmul.f32.gmra.mxu1 %v100_v42  ;;  %v55_v42 = vld [vmem:[%s2730_s0 + $0x148] sm:$0xff]  ;;  %v104_v44 = vld [vmem:[%s2730_s0 + $0x2d0] sm:$0xff] }
 0x14c   :  { %v604_v48 = vpop.f32.mrf.mxu2  ;;  %v751_v49 = vpop.f32.mrf.mxu3 }
 0x14d   :  { %1052 = vst [vmem:[%s2732_s3 + $0xa8] sm:$0xff] %v856_v46  ;;  %v605_v50 = vadd.f32 %v2147_v43, %v604_v48  ;;  %v752_v51 = vadd.f32 %v2147_v43, %v751_v49 }
 0x14e   :  { %1101 = vst [vmem:[%s2732_s3 + $0x230] sm:$0xff] %v905_v47 }
 0x14f   :  { %v954_v54 = vmax.f32 %v605_v50, 0.0  ;;  %v1003_v55 = vmax.f32 %v752_v51, 0.0 }
 0x150   :  { %v313_v56 = vpop.f32.mrf.mxu0  ;;  %v460_v57 = vpop.f32.mrf.mxu1 }
 0x151   :  { %1150 = vst [vmem:[%s2732_s3 + $0x3b8] sm:$0xff] %v954_v54  ;;  %654 = vmatmul.f32.gmra.mxu2 %v150_v52  ;;  %801 = vmatmul.f32.gmra.mxu3 %v199_v53  ;;  %v314_v60 = vadd.f32 %v2147_v43, %v313_v56  ;;  %v461_v61 = vadd.f32 %v2147_v43, %v460_v57  ;;  %v154_v53 = vld [vmem:[%s2730_s0 + $0x460] sm:$0xff]  ;;  %v203_v54 = vld [vmem:[%s2730_s0 + $0x5e8] sm:$0xff] }
 0x152   :  { %1199 = vst [vmem:[%s2732_s3 + $0x540] sm:$0xff] %v1003_v55 }
 0x153   :  { %v857_v62 = vmax.f32 %v314_v60, 0.0  ;;  %v906_v63 = vmax.f32 %v461_v61, 0.0  ;;  %360 = vmatmul.f32.gmra.mxu0 %v52_v58  ;;  %507 = vmatmul.f32.gmra.mxu1 %v101_v59  ;;  %v56_v59 = vld [vmem:[%s2730_s0 + $0x150] sm:$0xff]  ;;  %v105_v60 = vld [vmem:[%s2730_s0 + $0x2d8] sm:$0xff] }
 0x154   :  { %v607_v0 = vpop.f32.mrf.mxu2  ;;  %v754_v1 = vpop.f32.mrf.mxu3 }
 0x155   :  { %1053 = vst [vmem:[%s2732_s3 + $0xb0] sm:$0xff] %v857_v62  ;;  %v608_v2 = vadd.f32 %v2147_v43, %v607_v0  ;;  %v755_v3 = vadd.f32 %v2147_v43, %v754_v1 }
 0x156   :  { %1102 = vst [vmem:[%s2732_s3 + $0x238] sm:$0xff] %v906_v63 }
 0x157   :  { %v955_v6 = vmax.f32 %v608_v2, 0.0  ;;  %v1004_v7 = vmax.f32 %v755_v3, 0.0 }
 0x158   :  { %v316_v8 = vpop.f32.mrf.mxu0  ;;  %v463_v9 = vpop.f32.mrf.mxu1 }
 0x159   :  { %1151 = vst [vmem:[%s2732_s3 + $0x3c0] sm:$0xff] %v955_v6  ;;  %657 = vmatmul.f32.gmra.mxu2 %v151_v4  ;;  %804 = vmatmul.f32.gmra.mxu3 %v200_v5  ;;  %v317_v12 = vadd.f32 %v2147_v43, %v316_v8  ;;  %v464_v13 = vadd.f32 %v2147_v43, %v463_v9  ;;  %v155_v5 = vld [vmem:[%s2730_s0 + $0x468] sm:$0xff]  ;;  %v204_v6 = vld [vmem:[%s2730_s0 + $0x5f0] sm:$0xff] }
 0x15a   :  { %1200 = vst [vmem:[%s2732_s3 + $0x548] sm:$0xff] %v1004_v7 }
 0x15b   :  { %v858_v14 = vmax.f32 %v317_v12, 0.0  ;;  %v907_v15 = vmax.f32 %v464_v13, 0.0  ;;  %363 = vmatmul.f32.gmra.mxu0 %v53_v10  ;;  %510 = vmatmul.f32.gmra.mxu1 %v102_v11  ;;  %v57_v11 = vld [vmem:[%s2730_s0 + $0x158] sm:$0xff]  ;;  %v106_v12 = vld [vmem:[%s2730_s0 + $0x2e0] sm:$0xff] }
 0x15c   :  { %v610_v17 = vpop.f32.mrf.mxu2  ;;  %v757_v18 = vpop.f32.mrf.mxu3 }
 0x15d   :  { %1054 = vst [vmem:[%s2732_s3 + $0xb8] sm:$0xff] %v858_v14  ;;  %v611_v19 = vadd.f32 %v2147_v43, %v610_v17  ;;  %v758_v20 = vadd.f32 %v2147_v43, %v757_v18 }
 0x15e   :  { %1103 = vst [vmem:[%s2732_s3 + $0x240] sm:$0xff] %v907_v15 }
 0x15f   :  { %v956_v23 = vmax.f32 %v611_v19, 0.0  ;;  %v1005_v24 = vmax.f32 %v758_v20, 0.0 }
 0x160   :  { %v319_v25 = vpop.f32.mrf.mxu0  ;;  %v466_v26 = vpop.f32.mrf.mxu1 }
 0x161   :  { %1152 = vst [vmem:[%s2732_s3 + $0x3c8] sm:$0xff] %v956_v23  ;;  %660 = vmatmul.f32.gmra.mxu2 %v152_v21  ;;  %807 = vmatmul.f32.gmra.mxu3 %v201_v22  ;;  %v320_v29 = vadd.f32 %v2147_v43, %v319_v25  ;;  %v467_v30 = vadd.f32 %v2147_v43, %v466_v26  ;;  %v156_v22 = vld [vmem:[%s2730_s0 + $0x470] sm:$0xff]  ;;  %v205_v23 = vld [vmem:[%s2730_s0 + $0x5f8] sm:$0xff] }
 0x162   :  { %1201 = vst [vmem:[%s2732_s3 + $0x550] sm:$0xff] %v1005_v24 }
 0x163   :  { %v859_v31 = vmax.f32 %v320_v29, 0.0  ;;  %v908_v32 = vmax.f32 %v467_v30, 0.0  ;;  %366 = vmatmul.f32.gmra.mxu0 %v54_v27  ;;  %513 = vmatmul.f32.gmra.mxu1 %v103_v28  ;;  %v58_v28 = vld [vmem:[%s2730_s0 + $0x160] sm:$0xff]  ;;  %v107_v29 = vld [vmem:[%s2730_s0 + $0x2e8] sm:$0xff] }
 0x164   :  { %v613_v33 = vpop.f32.mrf.mxu2  ;;  %v760_v34 = vpop.f32.mrf.mxu3 }
 0x165   :  { %1055 = vst [vmem:[%s2732_s3 + $0xc0] sm:$0xff] %v859_v31  ;;  %v614_v35 = vadd.f32 %v2147_v43, %v613_v33  ;;  %v761_v36 = vadd.f32 %v2147_v43, %v760_v34 }
 0x166   :  { %1104 = vst [vmem:[%s2732_s3 + $0x248] sm:$0xff] %v908_v32 }
 0x167   :  { %v957_v39 = vmax.f32 %v614_v35, 0.0  ;;  %v1006_v40 = vmax.f32 %v761_v36, 0.0 }
 0x168   :  { %v322_v41 = vpop.f32.mrf.mxu0  ;;  %v469_v16 = vpop.f32.mrf.mxu1 }
 0x169   :  { %1153 = vst [vmem:[%s2732_s3 + $0x3d0] sm:$0xff] %v957_v39  ;;  %663 = vmatmul.f32.gmra.mxu2 %v153_v37  ;;  %810 = vmatmul.f32.gmra.mxu3 %v202_v38  ;;  %v323_v45 = vadd.f32 %v2147_v43, %v322_v41  ;;  %v470_v46 = vadd.f32 %v2147_v43, %v469_v16  ;;  %v157_v38 = vld [vmem:[%s2730_s0 + $0x478] sm:$0xff]  ;;  %v206_v39 = vld [vmem:[%s2730_s0 + $0x600] sm:$0xff] }
 0x16a   :  { %1202 = vst [vmem:[%s2732_s3 + $0x558] sm:$0xff] %v1006_v40 }
 0x16b   :  { %v860_v47 = vmax.f32 %v323_v45, 0.0  ;;  %v909_v48 = vmax.f32 %v470_v46, 0.0  ;;  %369 = vmatmul.f32.gmra.mxu0 %v55_v42  ;;  %516 = vmatmul.f32.gmra.mxu1 %v104_v44  ;;  %v59_v44 = vld [vmem:[%s2730_s0 + $0x168] sm:$0xff]  ;;  %v108_v45 = vld [vmem:[%s2730_s0 + $0x2f0] sm:$0xff] }
 0x16c   :  { %v616_v49 = vpop.f32.mrf.mxu2  ;;  %v763_v50 = vpop.f32.mrf.mxu3 }
 0x16d   :  { %1056 = vst [vmem:[%s2732_s3 + $0xc8] sm:$0xff] %v860_v47  ;;  %v617_v51 = vadd.f32 %v2147_v43, %v616_v49  ;;  %v764_v52 = vadd.f32 %v2147_v43, %v763_v50 }
 0x16e   :  { %1105 = vst [vmem:[%s2732_s3 + $0x250] sm:$0xff] %v909_v48 }
 0x16f   :  { %v958_v55 = vmax.f32 %v617_v51, 0.0  ;;  %v1007_v56 = vmax.f32 %v764_v52, 0.0 }
 0x170   :  { %v325_v57 = vpop.f32.mrf.mxu0  ;;  %v472_v58 = vpop.f32.mrf.mxu1 }
 0x171   :  { %1154 = vst [vmem:[%s2732_s3 + $0x3d8] sm:$0xff] %v958_v55  ;;  %666 = vmatmul.f32.gmra.mxu2 %v154_v53  ;;  %813 = vmatmul.f32.gmra.mxu3 %v203_v54  ;;  %v326_v61 = vadd.f32 %v2147_v43, %v325_v57  ;;  %v473_v62 = vadd.f32 %v2147_v43, %v472_v58  ;;  %v158_v54 = vld [vmem:[%s2730_s0 + $0x480] sm:$0xff]  ;;  %v207_v55 = vld [vmem:[%s2730_s0 + $0x608] sm:$0xff] }
 0x172   :  { %1203 = vst [vmem:[%s2732_s3 + $0x560] sm:$0xff] %v1007_v56 }
 0x173   :  { %v861_v63 = vmax.f32 %v326_v61, 0.0  ;;  %v910_v0 = vmax.f32 %v473_v62, 0.0  ;;  %372 = vmatmul.f32.gmra.mxu0 %v56_v59  ;;  %519 = vmatmul.f32.gmra.mxu1 %v105_v60  ;;  %v60_v60 = vld [vmem:[%s2730_s0 + $0x170] sm:$0xff]  ;;  %v109_v61 = vld [vmem:[%s2730_s0 + $0x2f8] sm:$0xff] }
 0x174   :  { %v619_v1 = vpop.f32.mrf.mxu2  ;;  %v766_v2 = vpop.f32.mrf.mxu3 }
 0x175   :  { %1057 = vst [vmem:[%s2732_s3 + $0xd0] sm:$0xff] %v861_v63  ;;  %v620_v3 = vadd.f32 %v2147_v43, %v619_v1  ;;  %v767_v4 = vadd.f32 %v2147_v43, %v766_v2 }
 0x176   :  { %1106 = vst [vmem:[%s2732_s3 + $0x258] sm:$0xff] %v910_v0 }
 0x177   :  { %v959_v7 = vmax.f32 %v620_v3, 0.0  ;;  %v1008_v8 = vmax.f32 %v767_v4, 0.0 }
 0x178   :  { %v328_v9 = vpop.f32.mrf.mxu0  ;;  %v475_v10 = vpop.f32.mrf.mxu1 }
 0x179   :  { %1155 = vst [vmem:[%s2732_s3 + $0x3e0] sm:$0xff] %v959_v7  ;;  %669 = vmatmul.f32.gmra.mxu2 %v155_v5  ;;  %816 = vmatmul.f32.gmra.mxu3 %v204_v6  ;;  %v329_v13 = vadd.f32 %v2147_v43, %v328_v9  ;;  %v476_v14 = vadd.f32 %v2147_v43, %v475_v10  ;;  %v159_v6 = vld [vmem:[%s2730_s0 + $0x488] sm:$0xff]  ;;  %v208_v7 = vld [vmem:[%s2730_s0 + $0x610] sm:$0xff] }
 0x17a   :  { %1204 = vst [vmem:[%s2732_s3 + $0x568] sm:$0xff] %v1008_v8 }
 0x17b   :  { %v862_v15 = vmax.f32 %v329_v13, 0.0  ;;  %v911_v17 = vmax.f32 %v476_v14, 0.0  ;;  %375 = vmatmul.f32.gmra.mxu0 %v57_v11  ;;  %522 = vmatmul.f32.gmra.mxu1 %v106_v12  ;;  %v61_v12 = vld [vmem:[%s2730_s0 + $0x178] sm:$0xff]  ;;  %v110_v13 = vld [vmem:[%s2730_s0 + $0x300] sm:$0xff] }
 0x17c   :  { %v622_v18 = vpop.f32.mrf.mxu2  ;;  %v769_v19 = vpop.f32.mrf.mxu3 }
 0x17d   :  { %1058 = vst [vmem:[%s2732_s3 + $0xd8] sm:$0xff] %v862_v15  ;;  %v623_v20 = vadd.f32 %v2147_v43, %v622_v18  ;;  %v770_v21 = vadd.f32 %v2147_v43, %v769_v19 }
 0x17e   :  { %1107 = vst [vmem:[%s2732_s3 + $0x260] sm:$0xff] %v911_v17 }
 0x17f   :  { %v960_v24 = vmax.f32 %v623_v20, 0.0  ;;  %v1009_v25 = vmax.f32 %v770_v21, 0.0 }
 0x180   :  { %v331_v26 = vpop.f32.mrf.mxu0  ;;  %v478_v27 = vpop.f32.mrf.mxu1 }
 0x181   :  { %1156 = vst [vmem:[%s2732_s3 + $0x3e8] sm:$0xff] %v960_v24  ;;  %672 = vmatmul.f32.gmra.mxu2 %v156_v22  ;;  %819 = vmatmul.f32.gmra.mxu3 %v205_v23  ;;  %v332_v30 = vadd.f32 %v2147_v43, %v331_v26  ;;  %v479_v31 = vadd.f32 %v2147_v43, %v478_v27  ;;  %v160_v23 = vld [vmem:[%s2730_s0 + $0x490] sm:$0xff]  ;;  %v209_v24 = vld [vmem:[%s2730_s0 + $0x618] sm:$0xff] }
 0x182   :  { %1205 = vst [vmem:[%s2732_s3 + $0x570] sm:$0xff] %v1009_v25 }
 0x183   :  { %v863_v32 = vmax.f32 %v332_v30, 0.0  ;;  %v912_v33 = vmax.f32 %v479_v31, 0.0  ;;  %378 = vmatmul.f32.gmra.mxu0 %v58_v28  ;;  %525 = vmatmul.f32.gmra.mxu1 %v107_v29  ;;  %v62_v29 = vld [vmem:[%s2730_s0 + $0x180] sm:$0xff]  ;;  %v111_v30 = vld [vmem:[%s2730_s0 + $0x308] sm:$0xff] }
 0x184   :  { %v625_v34 = vpop.f32.mrf.mxu2  ;;  %v772_v35 = vpop.f32.mrf.mxu3 }
 0x185   :  { %1059 = vst [vmem:[%s2732_s3 + $0xe0] sm:$0xff] %v863_v32  ;;  %v626_v36 = vadd.f32 %v2147_v43, %v625_v34  ;;  %v773_v37 = vadd.f32 %v2147_v43, %v772_v35 }
 0x186   :  { %1108 = vst [vmem:[%s2732_s3 + $0x268] sm:$0xff] %v912_v33 }
 0x187   :  { %v961_v40 = vmax.f32 %v626_v36, 0.0  ;;  %v1010_v41 = vmax.f32 %v773_v37, 0.0 }
 0x188   :  { %v334_v16 = vpop.f32.mrf.mxu0  ;;  %v481_v42 = vpop.f32.mrf.mxu1 }
 0x189   :  { %1157 = vst [vmem:[%s2732_s3 + $0x3f0] sm:$0xff] %v961_v40  ;;  %675 = vmatmul.f32.gmra.mxu2 %v157_v38  ;;  %822 = vmatmul.f32.gmra.mxu3 %v206_v39  ;;  %v335_v46 = vadd.f32 %v2147_v43, %v334_v16  ;;  %v482_v47 = vadd.f32 %v2147_v43, %v481_v42 }
 0x18a   :  { %1206 = vst [vmem:[%s2732_s3 + $0x578] sm:$0xff] %v1010_v41 }
 0x18b   :  { %v864_v48 = vmax.f32 %v335_v46, 0.0  ;;  %v913_v49 = vmax.f32 %v482_v47, 0.0  ;;  %381 = vmatmul.f32.gmra.mxu0 %v59_v44  ;;  %528 = vmatmul.f32.gmra.mxu1 %v108_v45 }
 0x18c   :  { %v628_v50 = vpop.f32.mrf.mxu2  ;;  %v775_v51 = vpop.f32.mrf.mxu3 }
 0x18d   :  { %1060 = vst [vmem:[%s2732_s3 + $0xe8] sm:$0xff] %v864_v48  ;;  %v629_v52 = vadd.f32 %v2147_v43, %v628_v50  ;;  %v776_v53 = vadd.f32 %v2147_v43, %v775_v51 }
 0x18e   :  { %1109 = vst [vmem:[%s2732_s3 + $0x270] sm:$0xff] %v913_v49 }
 0x18f   :  { %v962_v56 = vmax.f32 %v629_v52, 0.0  ;;  %v1011_v57 = vmax.f32 %v776_v53, 0.0 }
 0x190   :  { %v337_v58 = vpop.f32.mrf.mxu0  ;;  %v484_v59 = vpop.f32.mrf.mxu1 }
 0x191   :  { %1158 = vst [vmem:[%s2732_s3 + $0x3f8] sm:$0xff] %v962_v56  ;;  %678 = vmatmul.f32.gmra.mxu2 %v158_v54  ;;  %825 = vmatmul.f32.gmra.mxu3 %v207_v55  ;;  %v338_v62 = vadd.f32 %v2147_v43, %v337_v58  ;;  %v485_v63 = vadd.f32 %v2147_v43, %v484_v59 }
 0x192   :  { %1207 = vst [vmem:[%s2732_s3 + $0x580] sm:$0xff] %v1011_v57 }
 0x193   :  { %v865_v0 = vmax.f32 %v338_v62, 0.0  ;;  %v914_v1 = vmax.f32 %v485_v63, 0.0  ;;  %384 = vmatmul.f32.gmra.mxu0 %v60_v60  ;;  %531 = vmatmul.f32.gmra.mxu1 %v109_v61 }
 0x194   :  { %v631_v2 = vpop.f32.mrf.mxu2  ;;  %v778_v3 = vpop.f32.mrf.mxu3 }
 0x195   :  { %1061 = vst [vmem:[%s2732_s3 + $0xf0] sm:$0xff] %v865_v0  ;;  %v632_v4 = vadd.f32 %v2147_v43, %v631_v2  ;;  %v779_v5 = vadd.f32 %v2147_v43, %v778_v3 }
 0x196   :  { %1110 = vst [vmem:[%s2732_s3 + $0x278] sm:$0xff] %v914_v1 }
 0x197   :  { %v963_v8 = vmax.f32 %v632_v4, 0.0  ;;  %v1012_v9 = vmax.f32 %v779_v5, 0.0 }
 0x198   :  { %v340_v10 = vpop.f32.mrf.mxu0  ;;  %v487_v11 = vpop.f32.mrf.mxu1 }
 0x199   :  { %1159 = vst [vmem:[%s2732_s3 + $0x400] sm:$0xff] %v963_v8  ;;  %681 = vmatmul.f32.gmra.mxu2 %v159_v6  ;;  %828 = vmatmul.f32.gmra.mxu3 %v208_v7  ;;  %v341_v14 = vadd.f32 %v2147_v43, %v340_v10  ;;  %v488_v15 = vadd.f32 %v2147_v43, %v487_v11 }
 0x19a   :  { %1208 = vst [vmem:[%s2732_s3 + $0x588] sm:$0xff] %v1012_v9 }
 0x19b   :  { %v866_v17 = vmax.f32 %v341_v14, 0.0  ;;  %v915_v18 = vmax.f32 %v488_v15, 0.0  ;;  %387 = vmatmul.f32.gmra.mxu0 %v61_v12  ;;  %534 = vmatmul.f32.gmra.mxu1 %v110_v13 }
 0x19c   :  { %v634_v19 = vpop.f32.mrf.mxu2  ;;  %v781_v20 = vpop.f32.mrf.mxu3 }
 0x19d   :  { %1062 = vst [vmem:[%s2732_s3 + $0xf8] sm:$0xff] %v866_v17  ;;  %v635_v21 = vadd.f32 %v2147_v43, %v634_v19  ;;  %v782_v22 = vadd.f32 %v2147_v43, %v781_v20 }
 0x19e   :  { %1111 = vst [vmem:[%s2732_s3 + $0x280] sm:$0xff] %v915_v18 }
 0x19f   :  { %v964_v25 = vmax.f32 %v635_v21, 0.0  ;;  %v1013_v26 = vmax.f32 %v782_v22, 0.0 }
 0x1a0   :  { %v343_v27 = vpop.f32.mrf.mxu0  ;;  %v490_v28 = vpop.f32.mrf.mxu1 }
 0x1a1   :  { %1160 = vst [vmem:[%s2732_s3 + $0x408] sm:$0xff] %v964_v25  ;;  %684 = vmatmul.f32.gmra.mxu2 %v160_v23  ;;  %831 = vmatmul.f32.gmra.mxu3 %v209_v24  ;;  %v344_v31 = vadd.f32 %v2147_v43, %v343_v27  ;;  %v491_v32 = vadd.f32 %v2147_v43, %v490_v28 }
 0x1a2   :  { %1209 = vst [vmem:[%s2732_s3 + $0x590] sm:$0xff] %v1013_v26 }
 0x1a3   :  { %v867_v33 = vmax.f32 %v344_v31, 0.0  ;;  %v916_v34 = vmax.f32 %v491_v32, 0.0  ;;  %390 = vmatmul.f32.gmra.mxu0 %v62_v29  ;;  %537 = vmatmul.f32.gmra.mxu1 %v111_v30 }
 0x1a4   :  { %v637_v35 = vpop.f32.mrf.mxu2  ;;  %v784_v36 = vpop.f32.mrf.mxu3 }
 0x1a5   :  { %1063 = vst [vmem:[%s2732_s3 + $0x100] sm:$0xff] %v867_v33  ;;  %v638_v37 = vadd.f32 %v2147_v43, %v637_v35  ;;  %v785_v38 = vadd.f32 %v2147_v43, %v784_v36 }
 0x1a6   :  { %1112 = vst [vmem:[%s2732_s3 + $0x288] sm:$0xff] %v916_v34 }
 0x1a7   :  { %v965_v39 = vmax.f32 %v638_v37, 0.0  ;;  %v1014_v40 = vmax.f32 %v785_v38, 0.0 }
 0x1a8   :  { %v346_v41 = vpop.f32.mrf.mxu0  ;;  %v493_v16 = vpop.f32.mrf.mxu1 }
 0x1a9   :  { %1161 = vst [vmem:[%s2732_s3 + $0x410] sm:$0xff] %v965_v39  ;;  %v347_v42 = vadd.f32 %v2147_v43, %v346_v41  ;;  %v494_v44 = vadd.f32 %v2147_v43, %v493_v16 }
 0x1aa   :  { %1210 = vst [vmem:[%s2732_s3 + $0x598] sm:$0xff] %v1014_v40 }
 0x1ab   :  { %v868_v45 = vmax.f32 %v347_v42, 0.0  ;;  %v917_v46 = vmax.f32 %v494_v44, 0.0 }
 0x1ac   :  { %v640_v47 = vpop.f32.mrf.mxu2  ;;  %v787_v48 = vpop.f32.mrf.mxu3 }
 0x1ad   :  { %1064 = vst [vmem:[%s2732_s3 + $0x108] sm:$0xff] %v868_v45  ;;  %v641_v49 = vadd.f32 %v2147_v43, %v640_v47  ;;  %v788_v50 = vadd.f32 %v2147_v43, %v787_v48 }
 0x1ae   :  { %1113 = vst [vmem:[%s2732_s3 + $0x290] sm:$0xff] %v917_v46 }
 0x1af   :  { %v966_v51 = vmax.f32 %v641_v49, 0.0  ;;  %v1015_v52 = vmax.f32 %v788_v50, 0.0 }
 0x1b0   :  { %v349_v53 = vpop.f32.mrf.mxu0  ;;  %v496_v54 = vpop.f32.mrf.mxu1 }
 0x1b1   :  { %1162 = vst [vmem:[%s2732_s3 + $0x418] sm:$0xff] %v966_v51  ;;  %v350_v55 = vadd.f32 %v2147_v43, %v349_v53  ;;  %v497_v56 = vadd.f32 %v2147_v43, %v496_v54 }
 0x1b2   :  { %1211 = vst [vmem:[%s2732_s3 + $0x5a0] sm:$0xff] %v1015_v52 }
 0x1b3   :  { %v869_v57 = vmax.f32 %v350_v55, 0.0  ;;  %v918_v58 = vmax.f32 %v497_v56, 0.0 }
 0x1b4   :  { %v643_v59 = vpop.f32.mrf.mxu2  ;;  %v790_v60 = vpop.f32.mrf.mxu3 }
 0x1b5   :  { %1065 = vst [vmem:[%s2732_s3 + $0x110] sm:$0xff] %v869_v57  ;;  %v644_v61 = vadd.f32 %v2147_v43, %v643_v59  ;;  %v791_v62 = vadd.f32 %v2147_v43, %v790_v60 }
 0x1b6   :  { %1114 = vst [vmem:[%s2732_s3 + $0x298] sm:$0xff] %v918_v58 }
 0x1b7   :  { %v967_v63 = vmax.f32 %v644_v61, 0.0  ;;  %v1016_v0 = vmax.f32 %v791_v62, 0.0 }
 0x1b8   :  { %v352_v1 = vpop.f32.mrf.mxu0  ;;  %v499_v2 = vpop.f32.mrf.mxu1 }
 0x1b9   :  { %1163 = vst [vmem:[%s2732_s3 + $0x420] sm:$0xff] %v967_v63  ;;  %v353_v3 = vadd.f32 %v2147_v43, %v352_v1  ;;  %v500_v4 = vadd.f32 %v2147_v43, %v499_v2 }
 0x1ba   :  { %1212 = vst [vmem:[%s2732_s3 + $0x5a8] sm:$0xff] %v1016_v0 }
 0x1bb   :  { %v870_v5 = vmax.f32 %v353_v3, 0.0  ;;  %v919_v6 = vmax.f32 %v500_v4, 0.0 }
 0x1bc   :  { %v646_v7 = vpop.f32.mrf.mxu2  ;;  %v793_v8 = vpop.f32.mrf.mxu3 }
 0x1bd   :  { %1066 = vst [vmem:[%s2732_s3 + $0x118] sm:$0xff] %v870_v5  ;;  %v647_v9 = vadd.f32 %v2147_v43, %v646_v7  ;;  %v794_v10 = vadd.f32 %v2147_v43, %v793_v8 }
 0x1be   :  { %1115 = vst [vmem:[%s2732_s3 + $0x2a0] sm:$0xff] %v919_v6 }
 0x1bf   :  { %v968_v11 = vmax.f32 %v647_v9, 0.0  ;;  %v1017_v12 = vmax.f32 %v794_v10, 0.0 }
 0x1c0   :  { %v355_v13 = vpop.f32.mrf.mxu0  ;;  %v502_v14 = vpop.f32.mrf.mxu1 }
 0x1c1   :  { %1164 = vst [vmem:[%s2732_s3 + $0x428] sm:$0xff] %v968_v11  ;;  %v356_v15 = vadd.f32 %v2147_v43, %v355_v13  ;;  %v503_v17 = vadd.f32 %v2147_v43, %v502_v14 }
 0x1c2   :  { %1213 = vst [vmem:[%s2732_s3 + $0x5b0] sm:$0xff] %v1017_v12 }
 0x1c3   :  { %v871_v18 = vmax.f32 %v356_v15, 0.0  ;;  %v920_v19 = vmax.f32 %v503_v17, 0.0 }
 0x1c4   :  { %v649_v20 = vpop.f32.mrf.mxu2  ;;  %v796_v21 = vpop.f32.mrf.mxu3 }
 0x1c5   :  { %1067 = vst [vmem:[%s2732_s3 + $0x120] sm:$0xff] %v871_v18  ;;  %v650_v22 = vadd.f32 %v2147_v43, %v649_v20  ;;  %v797_v23 = vadd.f32 %v2147_v43, %v796_v21 }
 0x1c6   :  { %1116 = vst [vmem:[%s2732_s3 + $0x2a8] sm:$0xff] %v920_v19 }
 0x1c7   :  { %v969_v24 = vmax.f32 %v650_v22, 0.0  ;;  %v1018_v25 = vmax.f32 %v797_v23, 0.0 }
 0x1c8   :  { %v358_v26 = vpop.f32.mrf.mxu0  ;;  %v505_v27 = vpop.f32.mrf.mxu1 }
 0x1c9   :  { %1165 = vst [vmem:[%s2732_s3 + $0x430] sm:$0xff] %v969_v24  ;;  %v359_v28 = vadd.f32 %v2147_v43, %v358_v26  ;;  %v506_v29 = vadd.f32 %v2147_v43, %v505_v27 }
 0x1ca   :  { %1214 = vst [vmem:[%s2732_s3 + $0x5b8] sm:$0xff] %v1018_v25 }
 0x1cb   :  { %v872_v30 = vmax.f32 %v359_v28, 0.0  ;;  %v921_v31 = vmax.f32 %v506_v29, 0.0 }
 0x1cc   :  { %v652_v32 = vpop.f32.mrf.mxu2  ;;  %v799_v33 = vpop.f32.mrf.mxu3 }
 0x1cd   :  { %1068 = vst [vmem:[%s2732_s3 + $0x128] sm:$0xff] %v872_v30  ;;  %v653_v34 = vadd.f32 %v2147_v43, %v652_v32  ;;  %v800_v35 = vadd.f32 %v2147_v43, %v799_v33 }
 0x1ce   :  { %1117 = vst [vmem:[%s2732_s3 + $0x2b0] sm:$0xff] %v921_v31 }
 0x1cf   :  { %v970_v36 = vmax.f32 %v653_v34, 0.0  ;;  %v1019_v37 = vmax.f32 %v800_v35, 0.0 }
 0x1d0   :  { %v361_v38 = vpop.f32.mrf.mxu0  ;;  %v508_v39 = vpop.f32.mrf.mxu1 }
 0x1d1   :  { %1166 = vst [vmem:[%s2732_s3 + $0x438] sm:$0xff] %v970_v36  ;;  %v362_v40 = vadd.f32 %v2147_v43, %v361_v38  ;;  %v509_v41 = vadd.f32 %v2147_v43, %v508_v39 }
 0x1d2   :  { %1215 = vst [vmem:[%s2732_s3 + $0x5c0] sm:$0xff] %v1019_v37 }
 0x1d3   :  { %v873_v16 = vmax.f32 %v362_v40, 0.0  ;;  %v922_v42 = vmax.f32 %v509_v41, 0.0 }
 0x1d4   :  { %v655_v44 = vpop.f32.mrf.mxu2  ;;  %v802_v45 = vpop.f32.mrf.mxu3 }
 0x1d5   :  { %1069 = vst [vmem:[%s2732_s3 + $0x130] sm:$0xff] %v873_v16  ;;  %v656_v46 = vadd.f32 %v2147_v43, %v655_v44  ;;  %v803_v47 = vadd.f32 %v2147_v43, %v802_v45 }
 0x1d6   :  { %1118 = vst [vmem:[%s2732_s3 + $0x2b8] sm:$0xff] %v922_v42 }
 0x1d7   :  { %v971_v48 = vmax.f32 %v656_v46, 0.0  ;;  %v1020_v49 = vmax.f32 %v803_v47, 0.0 }
 0x1d8   :  { %v364_v50 = vpop.f32.mrf.mxu0  ;;  %v511_v51 = vpop.f32.mrf.mxu1 }
 0x1d9   :  { %1167 = vst [vmem:[%s2732_s3 + $0x440] sm:$0xff] %v971_v48  ;;  %v365_v52 = vadd.f32 %v2147_v43, %v364_v50  ;;  %v512_v53 = vadd.f32 %v2147_v43, %v511_v51 }
 0x1da   :  { %1216 = vst [vmem:[%s2732_s3 + $0x5c8] sm:$0xff] %v1020_v49 }
 0x1db   :  { %v874_v54 = vmax.f32 %v365_v52, 0.0  ;;  %v923_v55 = vmax.f32 %v512_v53, 0.0 }
 0x1dc   :  { %v658_v56 = vpop.f32.mrf.mxu2  ;;  %v805_v57 = vpop.f32.mrf.mxu3 }
 0x1dd   :  { %1070 = vst [vmem:[%s2732_s3 + $0x138] sm:$0xff] %v874_v54  ;;  %v659_v58 = vadd.f32 %v2147_v43, %v658_v56  ;;  %v806_v59 = vadd.f32 %v2147_v43, %v805_v57 }
 0x1de   :  { %1119 = vst [vmem:[%s2732_s3 + $0x2c0] sm:$0xff] %v923_v55 }
 0x1df   :  { %v972_v60 = vmax.f32 %v659_v58, 0.0  ;;  %v1021_v61 = vmax.f32 %v806_v59, 0.0 }
 0x1e0   :  { %v367_v62 = vpop.f32.mrf.mxu0  ;;  %v514_v63 = vpop.f32.mrf.mxu1 }
 0x1e1   :  { %1168 = vst [vmem:[%s2732_s3 + $0x448] sm:$0xff] %v972_v60  ;;  %v368_v0 = vadd.f32 %v2147_v43, %v367_v62  ;;  %v515_v1 = vadd.f32 %v2147_v43, %v514_v63 }
 0x1e2   :  { %1217 = vst [vmem:[%s2732_s3 + $0x5d0] sm:$0xff] %v1021_v61 }
 0x1e3   :  { %v875_v2 = vmax.f32 %v368_v0, 0.0  ;;  %v924_v3 = vmax.f32 %v515_v1, 0.0 }
 0x1e4   :  { %v661_v4 = vpop.f32.mrf.mxu2  ;;  %v808_v5 = vpop.f32.mrf.mxu3 }
 0x1e5   :  { %1071 = vst [vmem:[%s2732_s3 + $0x140] sm:$0xff] %v875_v2  ;;  %v662_v6 = vadd.f32 %v2147_v43, %v661_v4  ;;  %v809_v7 = vadd.f32 %v2147_v43, %v808_v5 }
 0x1e6   :  { %1120 = vst [vmem:[%s2732_s3 + $0x2c8] sm:$0xff] %v924_v3 }
 0x1e7   :  { %v973_v8 = vmax.f32 %v662_v6, 0.0  ;;  %v1022_v9 = vmax.f32 %v809_v7, 0.0 }
 0x1e8   :  { %v370_v10 = vpop.f32.mrf.mxu0  ;;  %v517_v11 = vpop.f32.mrf.mxu1 }
 0x1e9   :  { %1169 = vst [vmem:[%s2732_s3 + $0x450] sm:$0xff] %v973_v8  ;;  %v371_v12 = vadd.f32 %v2147_v43, %v370_v10  ;;  %v518_v13 = vadd.f32 %v2147_v43, %v517_v11 }
 0x1ea   :  { %1218 = vst [vmem:[%s2732_s3 + $0x5d8] sm:$0xff] %v1022_v9 }
 0x1eb   :  { %v876_v14 = vmax.f32 %v371_v12, 0.0  ;;  %v925_v15 = vmax.f32 %v518_v13, 0.0 }
 0x1ec   :  { %v664_v17 = vpop.f32.mrf.mxu2  ;;  %v811_v18 = vpop.f32.mrf.mxu3 }
 0x1ed   :  { %1072 = vst [vmem:[%s2732_s3 + $0x148] sm:$0xff] %v876_v14  ;;  %v665_v19 = vadd.f32 %v2147_v43, %v664_v17  ;;  %v812_v20 = vadd.f32 %v2147_v43, %v811_v18 }
 0x1ee   :  { %1121 = vst [vmem:[%s2732_s3 + $0x2d0] sm:$0xff] %v925_v15 }
 0x1ef   :  { %v974_v21 = vmax.f32 %v665_v19, 0.0  ;;  %v1023_v22 = vmax.f32 %v812_v20, 0.0 }
 0x1f0   :  { %v373_v23 = vpop.f32.mrf.mxu0  ;;  %v520_v24 = vpop.f32.mrf.mxu1 }
 0x1f1   :  { %1170 = vst [vmem:[%s2732_s3 + $0x458] sm:$0xff] %v974_v21  ;;  %v374_v25 = vadd.f32 %v2147_v43, %v373_v23  ;;  %v521_v26 = vadd.f32 %v2147_v43, %v520_v24 }
 0x1f2   :  { %1219 = vst [vmem:[%s2732_s3 + $0x5e0] sm:$0xff] %v1023_v22 }
 0x1f3   :  { %v877_v27 = vmax.f32 %v374_v25, 0.0  ;;  %v926_v28 = vmax.f32 %v521_v26, 0.0 }
 0x1f4   :  { %v667_v29 = vpop.f32.mrf.mxu2  ;;  %v814_v30 = vpop.f32.mrf.mxu3 }
 0x1f5   :  { %1073 = vst [vmem:[%s2732_s3 + $0x150] sm:$0xff] %v877_v27  ;;  %v668_v31 = vadd.f32 %v2147_v43, %v667_v29  ;;  %v815_v32 = vadd.f32 %v2147_v43, %v814_v30 }
 0x1f6   :  { %1122 = vst [vmem:[%s2732_s3 + $0x2d8] sm:$0xff] %v926_v28  ;;  %v1281_v28 = vld [vmem:[%s2731_s2] ss:$0 sm:$0xff] }
 0x1f7   :  { %v975_v33 = vmax.f32 %v668_v31, 0.0  ;;  %v1024_v34 = vmax.f32 %v815_v32, 0.0 }
 0x1f8   :  { %v376_v35 = vpop.f32.mrf.mxu0  ;;  %v523_v36 = vpop.f32.mrf.mxu1 }
 0x1f9   :  { %1171 = vst [vmem:[%s2732_s3 + $0x460] sm:$0xff] %v975_v33  ;;  %v377_v37 = vadd.f32 %v2147_v43, %v376_v35  ;;  %v524_v38 = vadd.f32 %v2147_v43, %v523_v36 }
 0x1fa   :  { %1220 = vst [vmem:[%s2732_s3 + $0x5e8] sm:$0xff] %v1024_v34 }
 0x1fb   :  { %v878_v39 = vmax.f32 %v377_v37, 0.0  ;;  %v927_v40 = vmax.f32 %v524_v38, 0.0 }
 0x1fc   :  { %v670_v41 = vpop.f32.mrf.mxu2  ;;  %v817_v16 = vpop.f32.mrf.mxu3 }
 0x1fd   :  { %1074 = vst [vmem:[%s2732_s3 + $0x158] sm:$0xff] %v878_v39  ;;  %v671_v42 = vadd.f32 %v2147_v43, %v670_v41  ;;  %v818_v44 = vadd.f32 %v2147_v43, %v817_v16 }
 0x1fe   :  { %1123 = vst [vmem:[%s2732_s3 + $0x2e0] sm:$0xff] %v927_v40 }
 0x1ff   :  { %v976_v45 = vmax.f32 %v671_v42, 0.0  ;;  %v1025_v46 = vmax.f32 %v818_v44, 0.0 }
 0x200   :  { %v379_v47 = vpop.f32.mrf.mxu0  ;;  %v526_v48 = vpop.f32.mrf.mxu1 }
 0x201   :  { %1172 = vst [vmem:[%s2732_s3 + $0x468] sm:$0xff] %v976_v45  ;;  %v380_v49 = vadd.f32 %v2147_v43, %v379_v47  ;;  %v527_v50 = vadd.f32 %v2147_v43, %v526_v48 }
 0x202   :  { %1221 = vst [vmem:[%s2732_s3 + $0x5f0] sm:$0xff] %v1025_v46 }
 0x203   :  { %v879_v51 = vmax.f32 %v380_v49, 0.0  ;;  %v928_v52 = vmax.f32 %v527_v50, 0.0 }
 0x204   :  { %v673_v53 = vpop.f32.mrf.mxu2  ;;  %v820_v54 = vpop.f32.mrf.mxu3 }
 0x205   :  { %1075 = vst [vmem:[%s2732_s3 + $0x160] sm:$0xff] %v879_v51  ;;  %v674_v55 = vadd.f32 %v2147_v43, %v673_v53  ;;  %v821_v56 = vadd.f32 %v2147_v43, %v820_v54 }
 0x206   :  { %1124 = vst [vmem:[%s2732_s3 + $0x2e8] sm:$0xff] %v928_v52 }
 0x207   :  { %v977_v57 = vmax.f32 %v674_v55, 0.0  ;;  %v1026_v58 = vmax.f32 %v821_v56, 0.0 }
 0x208   :  { %v382_v59 = vpop.f32.mrf.mxu0  ;;  %v529_v60 = vpop.f32.mrf.mxu1 }
 0x209   :  { %1173 = vst [vmem:[%s2732_s3 + $0x470] sm:$0xff] %v977_v57  ;;  %v383_v61 = vadd.f32 %v2147_v43, %v382_v59  ;;  %v530_v62 = vadd.f32 %v2147_v43, %v529_v60 }
 0x20a   :  { %1222 = vst [vmem:[%s2732_s3 + $0x5f8] sm:$0xff] %v1026_v58 }
 0x20b   :  { %v880_v63 = vmax.f32 %v383_v61, 0.0  ;;  %v929_v0 = vmax.f32 %v530_v62, 0.0 }
 0x20c   :  { %v676_v1 = vpop.f32.mrf.mxu2  ;;  %v823_v2 = vpop.f32.mrf.mxu3 }
 0x20d   :  { %1076 = vst [vmem:[%s2732_s3 + $0x168] sm:$0xff] %v880_v63  ;;  %v677_v3 = vadd.f32 %v2147_v43, %v676_v1  ;;  %v824_v4 = vadd.f32 %v2147_v43, %v823_v2 }
 0x20e   :  { %1125 = vst [vmem:[%s2732_s3 + $0x2f0] sm:$0xff] %v929_v0 }
 0x20f   :  { %v978_v5 = vmax.f32 %v677_v3, 0.0  ;;  %v1027_v6 = vmax.f32 %v824_v4, 0.0 }
 0x210   :  { %v385_v7 = vpop.f32.mrf.mxu0  ;;  %v532_v8 = vpop.f32.mrf.mxu1 }
 0x211   :  { %1174 = vst [vmem:[%s2732_s3 + $0x478] sm:$0xff] %v978_v5  ;;  %v386_v9 = vadd.f32 %v2147_v43, %v385_v7  ;;  %v533_v10 = vadd.f32 %v2147_v43, %v532_v8 }
 0x212   :  { %1223 = vst [vmem:[%s2732_s3 + $0x600] sm:$0xff] %v1027_v6 }
 0x213   :  { %v881_v11 = vmax.f32 %v386_v9, 0.0  ;;  %v930_v12 = vmax.f32 %v533_v10, 0.0 }
 0x214   :  { %v679_v13 = vpop.f32.mrf.mxu2  ;;  %v826_v14 = vpop.f32.mrf.mxu3 }
 0x215   :  { %1077 = vst [vmem:[%s2732_s3 + $0x170] sm:$0xff] %v881_v11  ;;  %v680_v15 = vadd.f32 %v2147_v43, %v679_v13  ;;  %v827_v17 = vadd.f32 %v2147_v43, %v826_v14 }
 0x216   :  { %1126 = vst [vmem:[%s2732_s3 + $0x2f8] sm:$0xff] %v930_v12 }
 0x217   :  { %v979_v18 = vmax.f32 %v680_v15, 0.0  ;;  %v1028_v19 = vmax.f32 %v827_v17, 0.0 }
 0x218   :  { %v388_v20 = vpop.f32.mrf.mxu0  ;;  %v535_v21 = vpop.f32.mrf.mxu1 }
 0x219   :  { %1175 = vst [vmem:[%s2732_s3 + $0x480] sm:$0xff] %v979_v18  ;;  %v389_v22 = vadd.f32 %v2147_v43, %v388_v20  ;;  %v536_v23 = vadd.f32 %v2147_v43, %v535_v21 }
 0x21a   :  { %1224 = vst [vmem:[%s2732_s3 + $0x608] sm:$0xff] %v1028_v19 }
 0x21b   :  { %v882_v24 = vmax.f32 %v389_v22, 0.0  ;;  %v931_v25 = vmax.f32 %v536_v23, 0.0 }
 0x21c   :  { %v682_v26 = vpop.f32.mrf.mxu2  ;;  %v829_v27 = vpop.f32.mrf.mxu3 }
 0x21d   :  { %1078 = vst [vmem:[%s2732_s3 + $0x178] sm:$0xff] %v882_v24  ;;  %v683_v29 = vadd.f32 %v1281_v28, %v682_v26  ;;  %v830_v30 = vadd.f32 %v1281_v28, %v829_v27 }
 0x21e   :  { %1127 = vst [vmem:[%s2732_s3 + $0x300] sm:$0xff] %v931_v25 }
 0x21f   :  { %v980_v43 = vmax.f32 %v683_v29, 0.0  ;;  %v1029_v31 = vmax.f32 %v830_v30, 0.0 }
 0x220   :  { %v391_v32 = vpop.f32.mrf.mxu0  ;;  %v538_v33 = vpop.f32.mrf.mxu1 }
 0x221   :  { %1176 = vst [vmem:[%s2732_s3 + $0x488] sm:$0xff] %v980_v43  ;;  %v392_v34 = vadd.f32 %v1281_v28, %v391_v32  ;;  %v539_v35 = vadd.f32 %v1281_v28, %v538_v33 }
 0x222   :  { %1225 = vst [vmem:[%s2732_s3 + $0x610] sm:$0xff] %v1029_v31 }
 0x223   :  { %v883_v36 = vmax.f32 %v392_v34, 0.0  ;;  %v932_v37 = vmax.f32 %v539_v35, 0.0 }
 0x224   :  { %v685_v38 = vpop.f32.mrf.mxu2  ;;  %v832_v39 = vpop.f32.mrf.mxu3 }
 0x225   :  { %1079 = vst [vmem:[%s2732_s3 + $0x180] sm:$0xff] %v883_v36  ;;  %v686_v40 = vadd.f32 %v1281_v28, %v685_v38  ;;  %v833_v41 = vadd.f32 %v1281_v28, %v832_v39 }
 0x226   :  { %1128 = vst [vmem:[%s2732_s3 + $0x308] sm:$0xff] %v932_v37 }
 0x227   :  { %v981_v16 = vmax.f32 %v686_v40, 0.0  ;;  %v1030_v42 = vmax.f32 %v833_v41, 0.0 }
 0x229   :  { %1177 = vst [vmem:[%s2732_s3 + $0x490] sm:$0xff] %v981_v16 }
 0x22a   :  { %1226 = vst [vmem:[%s2732_s3 + $0x618] sm:$0xff] %v1030_v42 }

// kernel: lenet_mix_forward.4
= control target key start
LH: loop header
LB: loop body
LE: loop exit
PB: predicated region body
PF: predicated region fallthrough
CT: control target
= control target key end

     0   :  { %s745_s1 = inlined_call_operand.vmem [shape: f32[256,128], index: 1, kind: input, shape index: {}]   ;;  %s746_s0 = inlined_call_operand.vmem [shape: f32[200,256], index: 0, kind: input, shape index: {}]   ;;  %s747_s2 = inlined_call_operand.vmem [shape: f32[1,128], index: 2, kind: input, shape index: {}]   ;;  %s748_s3 = inlined_call_operand.vmem [shape: f32[200,128], index: 3, kind: output, shape index: {}]  }
   0x1   :  { %v79_v0 = vld [vmem:[%s745_s1 + $0x78] sm:$0xff]  ;;  %v78_v2 = vld [vmem:[%s745_s1 + $0x70] sm:$0xff]  ;;  %v77_v4 = vld [vmem:[%s745_s1 + $0x68] sm:$0xff] }
   0x2   :  { %v95_v1 = vld [vmem:[%s745_s1 + $0xf8] sm:$0xff]  ;;  %338 = vmatpush.msra.mxu2 %v79_v0  ;;  %v94_v3 = vld [vmem:[%s745_s1 + $0xf0] sm:$0xff]  ;;  %v93_v5 = vld [vmem:[%s745_s1 + $0xe8] sm:$0xff]  ;;  %100 = vmatpush.msra.mxu0 %v79_v0 }
   0x3   :  { %192 = vmatpush.msra.mxu1 %v95_v1  ;;  %354 = vmatpush.msra.mxu3 %v95_v1  ;;  %v76_v6 = vld [vmem:[%s745_s1 + $0x60] sm:$0xff]  ;;  %v75_v8 = vld [vmem:[%s745_s1 + $0x58] sm:$0xff]  ;;  %v74_v10 = vld [vmem:[%s745_s1 + $0x50] sm:$0xff] }
   0x4   :  { %339 = vmatpush.msra.mxu2 %v78_v2  ;;  %v92_v7 = vld [vmem:[%s745_s1 + $0xe0] sm:$0xff]  ;;  %101 = vmatpush.msra.mxu0 %v78_v2  ;;  %v91_v9 = vld [vmem:[%s745_s1 + $0xd8] sm:$0xff]  ;;  %v90_v11 = vld [vmem:[%s745_s1 + $0xd0] sm:$0xff] }
   0x5   :  { %193 = vmatpush.msra.mxu1 %v94_v3  ;;  %355 = vmatpush.msra.mxu3 %v94_v3  ;;  %v73_v12 = vld [vmem:[%s745_s1 + $0x48] sm:$0xff]  ;;  %v72_v14 = vld [vmem:[%s745_s1 + $0x40] sm:$0xff]  ;;  %v71_v16 = vld [vmem:[%s745_s1 + $0x38] sm:$0xff] }
   0x6   :  { %340 = vmatpush.msra.mxu2 %v77_v4  ;;  %102 = vmatpush.msra.mxu0 %v77_v4  ;;  %v89_v13 = vld [vmem:[%s745_s1 + $0xc8] sm:$0xff]  ;;  %v88_v15 = vld [vmem:[%s745_s1 + $0xc0] sm:$0xff]  ;;  %v87_v17 = vld [vmem:[%s745_s1 + $0xb8] sm:$0xff] }
   0x7   :  { %194 = vmatpush.msra.mxu1 %v93_v5  ;;  %356 = vmatpush.msra.mxu3 %v93_v5  ;;  %v70_v18 = vld [vmem:[%s745_s1 + $0x30] sm:$0xff]  ;;  %v69_v20 = vld [vmem:[%s745_s1 + $0x28] sm:$0xff]  ;;  %v68_v22 = vld [vmem:[%s745_s1 + $0x20] sm:$0xff] }
   0x8   :  { %341 = vmatpush.msra.mxu2 %v76_v6  ;;  %103 = vmatpush.msra.mxu0 %v76_v6  ;;  %v86_v19 = vld [vmem:[%s745_s1 + $0xb0] sm:$0xff]  ;;  %v85_v21 = vld [vmem:[%s745_s1 + $0xa8] sm:$0xff]  ;;  %v84_v23 = vld [vmem:[%s745_s1 + $0xa0] sm:$0xff] }
   0x9   :  { %195 = vmatpush.msra.mxu1 %v92_v7  ;;  %357 = vmatpush.msra.mxu3 %v92_v7  ;;  %v67_v24 = vld [vmem:[%s745_s1 + $0x18] sm:$0xff]  ;;  %v66_v26 = vld [vmem:[%s745_s1 + $0x10] sm:$0xff]  ;;  %v65_v28 = vld [vmem:[%s745_s1 + $0x8] sm:$0xff] }
   0xa   :  { %342 = vmatpush.msra.mxu2 %v75_v8  ;;  %104 = vmatpush.msra.mxu0 %v75_v8  ;;  %v83_v25 = vld [vmem:[%s745_s1 + $0x98] sm:$0xff]  ;;  %v82_v27 = vld [vmem:[%s745_s1 + $0x90] sm:$0xff]  ;;  %v81_v29 = vld [vmem:[%s745_s1 + $0x88] sm:$0xff] }
   0xb   :  { %196 = vmatpush.msra.mxu1 %v91_v9  ;;  %358 = vmatpush.msra.mxu3 %v91_v9  ;;  %v64_v30 = vld [vmem:[%s745_s1] sm:$0xff]  ;;  %v15_v33 = vld [vmem:[%s746_s0 + $0x8] sm:$0xff]  ;;  %v41_v35 = vld [vmem:[%s746_s0 + $0xd8] sm:$0xff] }
   0xc   :  { %343 = vmatpush.msra.mxu2 %v74_v10  ;;  %105 = vmatpush.msra.mxu0 %v74_v10  ;;  %v80_v31 = vld [vmem:[%s745_s1 + $0x80] sm:$0xff]  ;;  %v40_v36 = vld [vmem:[%s746_s0 + $0xd0] sm:$0xff]  ;;  %v17_v37 = vld [vmem:[%s746_s0 + $0x18] sm:$0xff] }
   0xd   :  { %197 = vmatpush.msra.mxu1 %v90_v11  ;;  %359 = vmatpush.msra.mxu3 %v90_v11  ;;  %v38_v32 = vld [vmem:[%s746_s0 + $0xc0] sm:$0xff]  ;;  %v16_v38 = vld [vmem:[%s746_s0 + $0x10] sm:$0xff]  ;;  %v43_v39 = vld [vmem:[%s746_s0 + $0xe8] sm:$0xff] }
   0xe   :  { %344 = vmatpush.msra.mxu2 %v73_v12  ;;  %106 = vmatpush.msra.mxu0 %v73_v12  ;;  %v14_v34 = vld [vmem:[%s746_s0] sm:$0xff]  ;;  %v19_v41 = vld [vmem:[%s746_s0 + $0x28] sm:$0xff]  ;;  %v45_v43 = vld [vmem:[%s746_s0 + $0xf8] sm:$0xff] }
   0xf   :  { %198 = vmatpush.msra.mxu1 %v89_v13  ;;  %360 = vmatpush.msra.mxu3 %v89_v13  ;;  %v42_v40 = vld [vmem:[%s746_s0 + $0xe0] sm:$0xff]  ;;  %v44_v44 = vld [vmem:[%s746_s0 + $0xf0] sm:$0xff]  ;;  %v21_v45 = vld [vmem:[%s746_s0 + $0x38] sm:$0xff] }
  0x10   :  { %345 = vmatpush.msra.mxu2 %v72_v14  ;;  %107 = vmatpush.msra.mxu0 %v72_v14  ;;  %v18_v42 = vld [vmem:[%s746_s0 + $0x20] sm:$0xff]  ;;  %v20_v46 = vld [vmem:[%s746_s0 + $0x30] sm:$0xff]  ;;  %v47_v47 = vld [vmem:[%s746_s0 + $0x108] sm:$0xff] }
  0x11   :  { %199 = vmatpush.msra.mxu1 %v88_v15  ;;  %361 = vmatpush.msra.mxu3 %v88_v15  ;;  %v46_v48 = vld [vmem:[%s746_s0 + $0x100] sm:$0xff]  ;;  %v23_v49 = vld [vmem:[%s746_s0 + $0x48] sm:$0xff]  ;;  %v49_v51 = vld [vmem:[%s746_s0 + $0x118] sm:$0xff] }
  0x12   :  { %346 = vmatpush.msra.mxu2 %v71_v16  ;;  %108 = vmatpush.msra.mxu0 %v71_v16  ;;  %v22_v50 = vld [vmem:[%s746_s0 + $0x40] sm:$0xff]  ;;  %v48_v52 = vld [vmem:[%s746_s0 + $0x110] sm:$0xff]  ;;  %v25_v53 = vld [vmem:[%s746_s0 + $0x58] sm:$0xff] }
  0x13   :  { %200 = vmatpush.msra.mxu1 %v87_v17  ;;  %362 = vmatpush.msra.mxu3 %v87_v17  ;;  %v24_v54 = vld [vmem:[%s746_s0 + $0x50] sm:$0xff]  ;;  %v51_v55 = vld [vmem:[%s746_s0 + $0x128] sm:$0xff]  ;;  %v50_v56 = vld [vmem:[%s746_s0 + $0x120] sm:$0xff] }
  0x14   :  { %347 = vmatpush.msra.mxu2 %v70_v18  ;;  %109 = vmatpush.msra.mxu0 %v70_v18  ;;  %v27_v57 = vld [vmem:[%s746_s0 + $0x68] sm:$0xff]  ;;  %v26_v58 = vld [vmem:[%s746_s0 + $0x60] sm:$0xff]  ;;  %v53_v59 = vld [vmem:[%s746_s0 + $0x138] sm:$0xff] }
  0x15   :  { %201 = vmatpush.msra.mxu1 %v86_v19  ;;  %363 = vmatpush.msra.mxu3 %v86_v19  ;;  %v52_v60 = vld [vmem:[%s746_s0 + $0x130] sm:$0xff]  ;;  %v29_v61 = vld [vmem:[%s746_s0 + $0x78] sm:$0xff]  ;;  %v55_v63 = vld [vmem:[%s746_s0 + $0x148] sm:$0xff] }
  0x16   :  { %348 = vmatpush.msra.mxu2 %v69_v20  ;;  %110 = vmatpush.msra.mxu0 %v69_v20  ;;  %v28_v62 = vld [vmem:[%s746_s0 + $0x70] sm:$0xff]  ;;  %v54_v0 = vld [vmem:[%s746_s0 + $0x140] sm:$0xff]  ;;  %v31_v1 = vld [vmem:[%s746_s0 + $0x88] sm:$0xff] }
  0x17   :  { %202 = vmatpush.msra.mxu1 %v85_v21  ;;  %364 = vmatpush.msra.mxu3 %v85_v21  ;;  %v30_v2 = vld [vmem:[%s746_s0 + $0x80] sm:$0xff]  ;;  %v57_v3 = vld [vmem:[%s746_s0 + $0x158] sm:$0xff]  ;;  %v56_v4 = vld [vmem:[%s746_s0 + $0x150] sm:$0xff] }
  0x18   :  { %349 = vmatpush.msra.mxu2 %v68_v22  ;;  %111 = vmatpush.msra.mxu0 %v68_v22  ;;  %v33_v5 = vld [vmem:[%s746_s0 + $0x98] sm:$0xff]  ;;  %v32_v6 = vld [vmem:[%s746_s0 + $0x90] sm:$0xff]  ;;  %v59_v7 = vld [vmem:[%s746_s0 + $0x168] sm:$0xff] }
  0x19   :  { %203 = vmatpush.msra.mxu1 %v84_v23  ;;  %365 = vmatpush.msra.mxu3 %v84_v23  ;;  %v58_v8 = vld [vmem:[%s746_s0 + $0x160] sm:$0xff]  ;;  %v35_v9 = vld [vmem:[%s746_s0 + $0xa8] sm:$0xff]  ;;  %v61_v11 = vld [vmem:[%s746_s0 + $0x178] sm:$0xff] }
  0x1a   :  { %350 = vmatpush.msra.mxu2 %v67_v24  ;;  %112 = vmatpush.msra.mxu0 %v67_v24  ;;  %v34_v10 = vld [vmem:[%s746_s0 + $0xa0] sm:$0xff]  ;;  %v60_v12 = vld [vmem:[%s746_s0 + $0x170] sm:$0xff]  ;;  %v37_v13 = vld [vmem:[%s746_s0 + $0xb8] sm:$0xff] }
  0x1b   :  { %204 = vmatpush.msra.mxu1 %v83_v25  ;;  %366 = vmatpush.msra.mxu3 %v83_v25  ;;  %v36_v14 = vld [vmem:[%s746_s0 + $0xb0] sm:$0xff]  ;;  %v63_v15 = vld [vmem:[%s746_s0 + $0x188] sm:$0xff]  ;;  %v62_v16 = vld [vmem:[%s746_s0 + $0x180] sm:$0xff] }
  0x1c   :  { %351 = vmatpush.msra.mxu2 %v66_v26  ;;  %113 = vmatpush.msra.mxu0 %v66_v26  ;;  %v39_v17 = vld [vmem:[%s746_s0 + $0xc8] sm:$0xff]  ;;  %v640_v18 = vld [vmem:[%s747_s2] ss:$0 sm:$0xff] }
  0x1d   :  { %205 = vmatpush.msra.mxu1 %v82_v27  ;;  %367 = vmatpush.msra.mxu3 %v82_v27 }
  0x1e   :  { %352 = vmatpush.msra.mxu2 %v65_v28  ;;  %114 = vmatpush.msra.mxu0 %v65_v28 }
  0x1f   :  { %206 = vmatpush.msra.mxu1 %v81_v29  ;;  %368 = vmatpush.msra.mxu3 %v81_v29 }
  0x20   :  { %353 = vmatpush.msra.mxu2 %v64_v30  ;;  %115 = vmatpush.msra.mxu0 %v64_v30 }
  0x21   :  { %207 = vmatpush.msra.mxu1 %v80_v31  ;;  %152 = vmatmul.f32.vlgmr.msra.gmra.mxu2 %v38_v32 }
  0x22   :  { %208 = vmatmul.f32.vlgmr.msra.gmra.mxu1 %v15_v33  ;;  %369 = vmatpush.msra.mxu3 %v80_v31 }
  0x23   :  { %116 = vmatmul.f32.vlgmr.msra.gmra.mxu0 %v14_v34  ;;  %247 = vmatmul.f32.vlgmr.msra.gmra.mxu3 %v41_v35 }
  0x29   :  { %155 = vmatmul.f32.gmra.mxu2 %v40_v36 }
  0x2a   :  { %211 = vmatmul.f32.gmra.mxu1 %v17_v37 }
  0x2b   :  { %119 = vmatmul.f32.gmra.mxu0 %v16_v38  ;;  %250 = vmatmul.f32.gmra.mxu3 %v43_v39 }
  0x31   :  { %158 = vmatmul.f32.gmra.mxu2 %v42_v40 }
  0x32   :  { %214 = vmatmul.f32.gmra.mxu1 %v19_v41 }
  0x33   :  { %122 = vmatmul.f32.gmra.mxu0 %v18_v42  ;;  %253 = vmatmul.f32.gmra.mxu3 %v45_v43 }
  0x39   :  { %161 = vmatmul.f32.gmra.mxu2 %v44_v44 }
  0x3a   :  { %217 = vmatmul.f32.gmra.mxu1 %v21_v45 }
  0x3b   :  { %125 = vmatmul.f32.gmra.mxu0 %v20_v46  ;;  %256 = vmatmul.f32.gmra.mxu3 %v47_v47 }
  0x41   :  { %164 = vmatmul.f32.gmra.mxu2 %v46_v48 }
  0x42   :  { %220 = vmatmul.f32.gmra.mxu1 %v23_v49 }
  0x43   :  { %128 = vmatmul.f32.gmra.mxu0 %v22_v50  ;;  %259 = vmatmul.f32.gmra.mxu3 %v49_v51 }
  0x49   :  { %167 = vmatmul.f32.gmra.mxu2 %v48_v52 }
  0x4a   :  { %223 = vmatmul.f32.gmra.mxu1 %v25_v53 }
  0x4b   :  { %131 = vmatmul.f32.gmra.mxu0 %v24_v54  ;;  %262 = vmatmul.f32.gmra.mxu3 %v51_v55 }
  0x51   :  { %170 = vmatmul.f32.gmra.mxu2 %v50_v56 }
  0x52   :  { %226 = vmatmul.f32.gmra.mxu1 %v27_v57 }
  0x53   :  { %134 = vmatmul.f32.gmra.mxu0 %v26_v58  ;;  %265 = vmatmul.f32.gmra.mxu3 %v53_v59 }
  0x59   :  { %173 = vmatmul.f32.gmra.mxu2 %v52_v60 }
  0x5a   :  { %229 = vmatmul.f32.gmra.mxu1 %v29_v61 }
  0x5b   :  { %137 = vmatmul.f32.gmra.mxu0 %v28_v62  ;;  %268 = vmatmul.f32.gmra.mxu3 %v55_v63 }
  0x61   :  { %176 = vmatmul.f32.gmra.mxu2 %v54_v0 }
  0x62   :  { %232 = vmatmul.f32.gmra.mxu1 %v31_v1 }
  0x63   :  { %140 = vmatmul.f32.gmra.mxu0 %v30_v2  ;;  %271 = vmatmul.f32.gmra.mxu3 %v57_v3 }
  0x69   :  { %179 = vmatmul.f32.gmra.mxu2 %v56_v4 }
  0x6a   :  { %235 = vmatmul.f32.gmra.mxu1 %v33_v5 }
  0x6b   :  { %143 = vmatmul.f32.gmra.mxu0 %v32_v6  ;;  %274 = vmatmul.f32.gmra.mxu3 %v59_v7 }
  0x71   :  { %182 = vmatmul.f32.gmra.mxu2 %v58_v8 }
  0x72   :  { %238 = vmatmul.f32.gmra.mxu1 %v35_v9 }
  0x73   :  { %146 = vmatmul.f32.gmra.mxu0 %v34_v10  ;;  %277 = vmatmul.f32.gmra.mxu3 %v61_v11 }
  0x79   :  { %185 = vmatmul.f32.gmra.mxu2 %v60_v12 }
  0x7a   :  { %241 = vmatmul.f32.gmra.mxu1 %v37_v13 }
  0x7b   :  { %149 = vmatmul.f32.gmra.mxu0 %v36_v14  ;;  %280 = vmatmul.f32.gmra.mxu3 %v63_v15 }
  0x81   :  { %188 = vmatmul.f32.gmra.mxu2 %v62_v16 }
  0x82   :  { %244 = vmatmul.f32.gmra.mxu1 %v39_v17 }
  0x9f   :  { %v209_v19 = vpop.f32.mrf.mxu1 }
  0xa0   :  { %v117_v20 = vpop.f32.mrf.mxu0 }
  0xa1   :  { %v118_v21 = vadd.f32 %v640_v18, %v117_v20 }
  0xa3   :  { %v210_v22 = vadd.f32 %v209_v19, %v118_v21 }
  0xa4   :  { %v643_v23 = vpop.f32.mrf.mxu2 }
  0xa5   :  { %v284_v24 = vmax.f32 %v210_v22, 0.0 }
  0xa6   :  { %v248_v26 = vpop.f32.mrf.mxu3 }
  0xa7   :  { %v212_v25 = vpop.f32.mrf.mxu1  ;;  %309 = vst [vmem:[%s748_s3] sm:$0xff] %v284_v24 }
  0xa8   :  { %v120_v27 = vpop.f32.mrf.mxu0 }
  0xa9   :  { %v121_v28 = vadd.f32 %v640_v18, %v120_v27 }
  0xab   :  { %v213_v29 = vadd.f32 %v212_v25, %v121_v28 }
  0xac   :  { %v156_v30 = vpop.f32.mrf.mxu2 }
  0xad   :  { %v285_v31 = vmax.f32 %v213_v29, 0.0  ;;  %v157_v32 = vadd.f32 %v640_v18, %v156_v30 }
  0xae   :  { %v251_v34 = vpop.f32.mrf.mxu3 }
  0xaf   :  { %v215_v33 = vpop.f32.mrf.mxu1  ;;  %310 = vst [vmem:[%s748_s3 + $0x8] sm:$0xff] %v285_v31  ;;  %v249_v35 = vadd.f32 %v248_v26, %v157_v32 }
  0xb0   :  { %v123_v36 = vpop.f32.mrf.mxu0 }
  0xb1   :  { %v297_v37 = vmax.f32 %v249_v35, 0.0  ;;  %v124_v38 = vadd.f32 %v640_v18, %v123_v36 }
  0xb3   :  { %322 = vst [vmem:[%s748_s3 + $0x68] sm:$0xff] %v297_v37  ;;  %v216_v39 = vadd.f32 %v215_v33, %v124_v38 }
  0xb4   :  { %v159_v40 = vpop.f32.mrf.mxu2 }
  0xb5   :  { %v286_v41 = vmax.f32 %v216_v39, 0.0  ;;  %v160_v42 = vadd.f32 %v640_v18, %v159_v40 }
  0xb6   :  { %v254_v44 = vpop.f32.mrf.mxu3 }
  0xb7   :  { %v218_v43 = vpop.f32.mrf.mxu1  ;;  %311 = vst [vmem:[%s748_s3 + $0x10] sm:$0xff] %v286_v41  ;;  %v252_v45 = vadd.f32 %v251_v34, %v160_v42 }
  0xb8   :  { %v126_v46 = vpop.f32.mrf.mxu0 }
  0xb9   :  { %v298_v47 = vmax.f32 %v252_v45, 0.0  ;;  %v127_v48 = vadd.f32 %v640_v18, %v126_v46 }
  0xbb   :  { %323 = vst [vmem:[%s748_s3 + $0x70] sm:$0xff] %v298_v47  ;;  %v219_v49 = vadd.f32 %v218_v43, %v127_v48 }
  0xbc   :  { %v162_v50 = vpop.f32.mrf.mxu2 }
  0xbd   :  { %v287_v51 = vmax.f32 %v219_v49, 0.0  ;;  %v163_v52 = vadd.f32 %v640_v18, %v162_v50 }
  0xbe   :  { %v257_v54 = vpop.f32.mrf.mxu3 }
  0xbf   :  { %v221_v53 = vpop.f32.mrf.mxu1  ;;  %312 = vst [vmem:[%s748_s3 + $0x18] sm:$0xff] %v287_v51  ;;  %v255_v55 = vadd.f32 %v254_v44, %v163_v52 }
  0xc0   :  { %v129_v56 = vpop.f32.mrf.mxu0 }
  0xc1   :  { %v299_v57 = vmax.f32 %v255_v55, 0.0  ;;  %v130_v58 = vadd.f32 %v640_v18, %v129_v56 }
  0xc3   :  { %324 = vst [vmem:[%s748_s3 + $0x78] sm:$0xff] %v299_v57  ;;  %v222_v59 = vadd.f32 %v221_v53, %v130_v58 }
  0xc4   :  { %v165_v60 = vpop.f32.mrf.mxu2 }
  0xc5   :  { %v288_v61 = vmax.f32 %v222_v59, 0.0  ;;  %v166_v62 = vadd.f32 %v640_v18, %v165_v60 }
  0xc6   :  { %v260_v0 = vpop.f32.mrf.mxu3 }
  0xc7   :  { %v224_v63 = vpop.f32.mrf.mxu1  ;;  %313 = vst [vmem:[%s748_s3 + $0x20] sm:$0xff] %v288_v61  ;;  %v258_v1 = vadd.f32 %v257_v54, %v166_v62 }
  0xc8   :  { %v132_v2 = vpop.f32.mrf.mxu0 }
  0xc9   :  { %v300_v3 = vmax.f32 %v258_v1, 0.0  ;;  %v133_v4 = vadd.f32 %v640_v18, %v132_v2 }
  0xcb   :  { %325 = vst [vmem:[%s748_s3 + $0x80] sm:$0xff] %v300_v3  ;;  %v225_v5 = vadd.f32 %v224_v63, %v133_v4 }
  0xcc   :  { %v168_v6 = vpop.f32.mrf.mxu2 }
  0xcd   :  { %v289_v7 = vmax.f32 %v225_v5, 0.0  ;;  %v169_v8 = vadd.f32 %v640_v18, %v168_v6  ;;  %v154_v5 = vadd.f32 %v640_v18, %v643_v23 }
  0xce   :  { %v263_v10 = vpop.f32.mrf.mxu3 }
  0xcf   :  { %v227_v9 = vpop.f32.mrf.mxu1  ;;  %314 = vst [vmem:[%s748_s3 + $0x28] sm:$0xff] %v289_v7  ;;  %v261_v11 = vadd.f32 %v260_v0, %v169_v8 }
  0xd0   :  { %v135_v12 = vpop.f32.mrf.mxu0 }
  0xd1   :  { %v301_v13 = vmax.f32 %v261_v11, 0.0  ;;  %v136_v14 = vadd.f32 %v640_v18, %v135_v12 }
  0xd3   :  { %326 = vst [vmem:[%s748_s3 + $0x88] sm:$0xff] %v301_v13  ;;  %v228_v15 = vadd.f32 %v227_v9, %v136_v14 }
  0xd4   :  { %v171_v16 = vpop.f32.mrf.mxu2 }
  0xd5   :  { %v290_v17 = vmax.f32 %v228_v15, 0.0  ;;  %v172_v19 = vadd.f32 %v640_v18, %v171_v16 }
  0xd6   :  { %v266_v21 = vpop.f32.mrf.mxu3 }
  0xd7   :  { %v230_v20 = vpop.f32.mrf.mxu1  ;;  %315 = vst [vmem:[%s748_s3 + $0x30] sm:$0xff] %v290_v17  ;;  %v264_v22 = vadd.f32 %v263_v10, %v172_v19 }
  0xd8   :  { %v138_v24 = vpop.f32.mrf.mxu0 }
  0xd9   :  { %v302_v25 = vmax.f32 %v264_v22, 0.0  ;;  %v139_v26 = vadd.f32 %v640_v18, %v138_v24 }
  0xdb   :  { %327 = vst [vmem:[%s748_s3 + $0x90] sm:$0xff] %v302_v25  ;;  %v231_v27 = vadd.f32 %v230_v20, %v139_v26 }
  0xdc   :  { %v174_v28 = vpop.f32.mrf.mxu2 }
  0xdd   :  { %v291_v29 = vmax.f32 %v231_v27, 0.0  ;;  %v175_v30 = vadd.f32 %v640_v18, %v174_v28 }
  0xde   :  { %v269_v32 = vpop.f32.mrf.mxu3 }
  0xdf   :  { %v233_v31 = vpop.f32.mrf.mxu1  ;;  %316 = vst [vmem:[%s748_s3 + $0x38] sm:$0xff] %v291_v29  ;;  %v267_v33 = vadd.f32 %v266_v21, %v175_v30 }
  0xe0   :  { %v141_v34 = vpop.f32.mrf.mxu0 }
  0xe1   :  { %v303_v35 = vmax.f32 %v267_v33, 0.0  ;;  %v142_v36 = vadd.f32 %v640_v18, %v141_v34 }
  0xe3   :  { %328 = vst [vmem:[%s748_s3 + $0x98] sm:$0xff] %v303_v35  ;;  %v234_v37 = vadd.f32 %v233_v31, %v142_v36 }
  0xe4   :  { %v177_v38 = vpop.f32.mrf.mxu2 }
  0xe5   :  { %v292_v39 = vmax.f32 %v234_v37, 0.0  ;;  %v178_v40 = vadd.f32 %v640_v18, %v177_v38 }
  0xe6   :  { %v272_v42 = vpop.f32.mrf.mxu3 }
  0xe7   :  { %v236_v41 = vpop.f32.mrf.mxu1  ;;  %317 = vst [vmem:[%s748_s3 + $0x40] sm:$0xff] %v292_v39  ;;  %v270_v43 = vadd.f32 %v269_v32, %v178_v40 }
  0xe8   :  { %v144_v44 = vpop.f32.mrf.mxu0 }
  0xe9   :  { %v304_v45 = vmax.f32 %v270_v43, 0.0  ;;  %v145_v46 = vadd.f32 %v640_v18, %v144_v44 }
  0xeb   :  { %329 = vst [vmem:[%s748_s3 + $0xa0] sm:$0xff] %v304_v45  ;;  %v237_v47 = vadd.f32 %v236_v41, %v145_v46 }
  0xec   :  { %v180_v48 = vpop.f32.mrf.mxu2 }
  0xed   :  { %v293_v49 = vmax.f32 %v237_v47, 0.0  ;;  %v181_v50 = vadd.f32 %v640_v18, %v180_v48 }
  0xee   :  { %v275_v54 = vpop.f32.mrf.mxu3 }
  0xef   :  { %v239_v51 = vpop.f32.mrf.mxu1  ;;  %318 = vst [vmem:[%s748_s3 + $0x48] sm:$0xff] %v293_v49  ;;  %v273_v52 = vadd.f32 %v272_v42, %v181_v50 }
  0xf0   :  { %v147_v53 = vpop.f32.mrf.mxu0 }
  0xf1   :  { %v305_v55 = vmax.f32 %v273_v52, 0.0  ;;  %v148_v56 = vadd.f32 %v640_v18, %v147_v53 }
  0xf3   :  { %330 = vst [vmem:[%s748_s3 + $0xa8] sm:$0xff] %v305_v55  ;;  %v240_v57 = vadd.f32 %v239_v51, %v148_v56 }
  0xf4   :  { %v183_v58 = vpop.f32.mrf.mxu2 }
  0xf5   :  { %v294_v59 = vmax.f32 %v240_v57, 0.0  ;;  %v184_v60 = vadd.f32 %v640_v18, %v183_v58 }
  0xf6   :  { %v278_v2 = vpop.f32.mrf.mxu3 }
  0xf7   :  { %v242_v61 = vpop.f32.mrf.mxu1  ;;  %319 = vst [vmem:[%s748_s3 + $0x50] sm:$0xff] %v294_v59  ;;  %v276_v62 = vadd.f32 %v275_v54, %v184_v60 }
  0xf8   :  { %v150_v63 = vpop.f32.mrf.mxu0 }
  0xf9   :  { %v306_v0 = vmax.f32 %v276_v62, 0.0  ;;  %v151_v1 = vadd.f32 %v640_v18, %v150_v63 }
  0xfb   :  { %331 = vst [vmem:[%s748_s3 + $0xb0] sm:$0xff] %v306_v0  ;;  %v243_v3 = vadd.f32 %v242_v61, %v151_v1 }
  0xfc   :  { %v186_v4 = vpop.f32.mrf.mxu2 }
  0xfd   :  { %v295_v6 = vmax.f32 %v243_v3, 0.0  ;;  %v187_v7 = vadd.f32 %v640_v18, %v186_v4 }
  0xfe   :  { %v281_v13 = vpop.f32.mrf.mxu3 }
  0xff   :  { %v245_v8 = vpop.f32.mrf.mxu1  ;;  %320 = vst [vmem:[%s748_s3 + $0x58] sm:$0xff] %v295_v6  ;;  %v279_v10 = vadd.f32 %v278_v2, %v187_v7 }
 0x100   :  { %v246_v9 = vadd.f32 %v245_v8, %v154_v5 }
 0x101   :  { %v307_v12 = vmax.f32 %v279_v10, 0.0 }
 0x102   :  { %v296_v11 = vmax.f32 %v246_v9, 0.0 }
 0x103   :  { %332 = vst [vmem:[%s748_s3 + $0xb8] sm:$0xff] %v307_v12 }
 0x104   :  { %321 = vst [vmem:[%s748_s3 + $0x60] sm:$0xff] %v296_v11  ;;  %v189_v23 = vpop.f32.mrf.mxu2 }
 0x105   :  { %v190_v14 = vadd.f32 %v640_v18, %v189_v23 }
 0x107   :  { %v282_v15 = vadd.f32 %v281_v13, %v190_v14 }
 0x109   :  { %v308_v16 = vmax.f32 %v282_v15, 0.0 }
 0x10b   :  { %333 = vst [vmem:[%s748_s3 + $0xc0] sm:$0xff] %v308_v16 }

// kernel: lenet_mix_forward.5
= control target key start
LH: loop header
LB: loop body
LE: loop exit
PB: predicated region body
PF: predicated region fallthrough
CT: control target
= control target key end

     0   :  { %s659_s0 = inlined_call_operand.vmem [shape: f32[2,512], index: 0, kind: input, shape index: {}]   ;;  %s660_s1 = inlined_call_operand.vmem [shape: f32[512,128], index: 1, kind: input, shape index: {}]   ;;  %s661_s2 = inlined_call_operand.vmem [shape: f32[1,128], index: 2, kind: input, shape index: {}]   ;;  %s662_s3 = inlined_call_operand.vmem [shape: f32[128,128], index: 3, kind: input, shape index: {}]   ;;  %s663_s4 = inlined_call_operand.vmem [shape: f32[1,128], index: 4, kind: input, shape index: {}]   ;;  %s664_s5 = inlined_call_operand.vmem [shape: f32[128,128], index: 5, kind: input, shape index: {}]   ;;  %s665_s6 = inlined_call_operand.vmem [shape: f32[1,128], index: 6, kind: input, shape index: {}]   ;;  %s666_s7 = inlined_call_operand.hbm [shape: f32[2,128], index: 7, kind: output, shape index: {}]  }
   0x1   :  { %v75_v0 = vld [vmem:[%s660_s1 + $0x178] sm:$0xff]  ;;  %v74_v2 = vld [vmem:[%s660_s1 + $0x170] sm:$0xff]  ;;  %v73_v6 = vld [vmem:[%s660_s1 + $0x168] sm:$0xff] }
   0x2   :  { %v43_v1 = vld [vmem:[%s660_s1 + $0x78] sm:$0xff]  ;;  %146 = vmatpush.msra.mxu2 %v75_v0  ;;  %v42_v4 = vld [vmem:[%s660_s1 + $0x70] sm:$0xff]  ;;  %v41_v8 = vld [vmem:[%s660_s1 + $0x68] sm:$0xff] }
   0x3   :  { %106 = vmatpush.msra.mxu0 %v43_v1  ;;  %v91_v3 = vld [vmem:[%s660_s1 + $0x1f8] sm:$0xff]  ;;  %v90_v7 = vld [vmem:[%s660_s1 + $0x1f0] sm:$0xff]  ;;  %v89_v10 = vld [vmem:[%s660_s1 + $0x1e8] sm:$0xff] }
   0x4   :  { %v59_v5 = vld [vmem:[%s660_s1 + $0xf8] sm:$0xff]  ;;  %166 = vmatpush.msra.mxu3 %v91_v3  ;;  %147 = vmatpush.msra.mxu2 %v74_v2  ;;  %v58_v9 = vld [vmem:[%s660_s1 + $0xf0] sm:$0xff]  ;;  %v72_v11 = vld [vmem:[%s660_s1 + $0x160] sm:$0xff] }
   0x5   :  { %126 = vmatpush.msra.mxu1 %v59_v5  ;;  %107 = vmatpush.msra.mxu0 %v42_v4  ;;  %v40_v12 = vld [vmem:[%s660_s1 + $0x60] sm:$0xff]  ;;  %v57_v13 = vld [vmem:[%s660_s1 + $0xe8] sm:$0xff]  ;;  %v71_v16 = vld [vmem:[%s660_s1 + $0x158] sm:$0xff] }
   0x6   :  { %167 = vmatpush.msra.mxu3 %v90_v7  ;;  %148 = vmatpush.msra.mxu2 %v73_v6  ;;  %v88_v14 = vld [vmem:[%s660_s1 + $0x1e0] sm:$0xff]  ;;  %v39_v17 = vld [vmem:[%s660_s1 + $0x58] sm:$0xff]  ;;  %v70_v20 = vld [vmem:[%s660_s1 + $0x150] sm:$0xff] }
   0x7   :  { %127 = vmatpush.msra.mxu1 %v58_v9  ;;  %108 = vmatpush.msra.mxu0 %v41_v8  ;;  %v56_v15 = vld [vmem:[%s660_s1 + $0xe0] sm:$0xff]  ;;  %v87_v18 = vld [vmem:[%s660_s1 + $0x1d8] sm:$0xff]  ;;  %v38_v21 = vld [vmem:[%s660_s1 + $0x50] sm:$0xff] }
   0x8   :  { %168 = vmatpush.msra.mxu3 %v89_v10  ;;  %149 = vmatpush.msra.mxu2 %v72_v11  ;;  %v55_v19 = vld [vmem:[%s660_s1 + $0xd8] sm:$0xff]  ;;  %v86_v22 = vld [vmem:[%s660_s1 + $0x1d0] sm:$0xff]  ;;  %v69_v24 = vld [vmem:[%s660_s1 + $0x148] sm:$0xff] }
   0x9   :  { %128 = vmatpush.msra.mxu1 %v57_v13  ;;  %109 = vmatpush.msra.mxu0 %v40_v12  ;;  %v54_v23 = vld [vmem:[%s660_s1 + $0xd0] sm:$0xff]  ;;  %v37_v25 = vld [vmem:[%s660_s1 + $0x48] sm:$0xff]  ;;  %v68_v28 = vld [vmem:[%s660_s1 + $0x140] sm:$0xff] }
   0xa   :  { %169 = vmatpush.msra.mxu3 %v88_v14  ;;  %150 = vmatpush.msra.mxu2 %v71_v16  ;;  %v85_v26 = vld [vmem:[%s660_s1 + $0x1c8] sm:$0xff]  ;;  %v36_v29 = vld [vmem:[%s660_s1 + $0x40] sm:$0xff]  ;;  %v67_v32 = vld [vmem:[%s660_s1 + $0x138] sm:$0xff] }
   0xb   :  { %129 = vmatpush.msra.mxu1 %v56_v15  ;;  %110 = vmatpush.msra.mxu0 %v39_v17  ;;  %v53_v27 = vld [vmem:[%s660_s1 + $0xc8] sm:$0xff]  ;;  %v84_v30 = vld [vmem:[%s660_s1 + $0x1c0] sm:$0xff]  ;;  %v35_v33 = vld [vmem:[%s660_s1 + $0x38] sm:$0xff] }
   0xc   :  { %170 = vmatpush.msra.mxu3 %v87_v18  ;;  %151 = vmatpush.msra.mxu2 %v70_v20  ;;  %v52_v31 = vld [vmem:[%s660_s1 + $0xc0] sm:$0xff]  ;;  %v83_v34 = vld [vmem:[%s660_s1 + $0x1b8] sm:$0xff]  ;;  %v66_v36 = vld [vmem:[%s660_s1 + $0x130] sm:$0xff] }
   0xd   :  { %130 = vmatpush.msra.mxu1 %v55_v19  ;;  %111 = vmatpush.msra.mxu0 %v38_v21  ;;  %v51_v35 = vld [vmem:[%s660_s1 + $0xb8] sm:$0xff]  ;;  %v34_v37 = vld [vmem:[%s660_s1 + $0x30] sm:$0xff]  ;;  %v65_v40 = vld [vmem:[%s660_s1 + $0x128] sm:$0xff] }
   0xe   :  { %171 = vmatpush.msra.mxu3 %v86_v22  ;;  %152 = vmatpush.msra.mxu2 %v69_v24  ;;  %v82_v38 = vld [vmem:[%s660_s1 + $0x1b0] sm:$0xff]  ;;  %v33_v41 = vld [vmem:[%s660_s1 + $0x28] sm:$0xff]  ;;  %v64_v44 = vld [vmem:[%s660_s1 + $0x120] sm:$0xff] }
   0xf   :  { %131 = vmatpush.msra.mxu1 %v54_v23  ;;  %112 = vmatpush.msra.mxu0 %v37_v25  ;;  %v50_v39 = vld [vmem:[%s660_s1 + $0xb0] sm:$0xff]  ;;  %v81_v42 = vld [vmem:[%s660_s1 + $0x1a8] sm:$0xff]  ;;  %v32_v45 = vld [vmem:[%s660_s1 + $0x20] sm:$0xff] }
  0x10   :  { %172 = vmatpush.msra.mxu3 %v85_v26  ;;  %153 = vmatpush.msra.mxu2 %v68_v28  ;;  %v49_v43 = vld [vmem:[%s660_s1 + $0xa8] sm:$0xff]  ;;  %v27_v46 = vld [vmem:[%s659_s0] sm:$0xff]  ;;  %v63_v49 = vld [vmem:[%s660_s1 + $0x118] sm:$0xff] }
  0x11   :  { %132 = vmatpush.msra.mxu1 %v53_v27  ;;  %113 = vmatpush.msra.mxu0 %v36_v29  ;;  %v80_v47 = vld [vmem:[%s660_s1 + $0x1a0] sm:$0xff]  ;;  %97 = vst [vmem:[#allocation1] ss:$4 sm:$0xff] %v27_v46  ;;  %v31_v50 = vld [vmem:[%s660_s1 + $0x18] sm:$0xff]  ;;  %v62_v51 = vld [vmem:[%s660_s1 + $0x110] sm:$0xff] }
  0x12   :  { %173 = vmatpush.msra.mxu3 %v84_v30  ;;  %154 = vmatpush.msra.mxu2 %v67_v32  ;;  %v48_v48 = vld [vmem:[%s660_s1 + $0xa0] sm:$0xff]  ;;  %v79_v52 = vld [vmem:[%s660_s1 + $0x198] sm:$0xff]  ;;  %v30_v54 = vld [vmem:[%s660_s1 + $0x10] sm:$0xff] }
  0x13   :  { %133 = vmatpush.msra.mxu1 %v52_v31  ;;  %114 = vmatpush.msra.mxu0 %v35_v33  ;;  %v47_v53 = vld [vmem:[%s660_s1 + $0x98] sm:$0xff]  ;;  %v61_v55 = vld [vmem:[%s660_s1 + $0x108] sm:$0xff]  ;;  %v78_v56 = vld [vmem:[%s660_s1 + $0x190] sm:$0xff] }
  0x14   :  { %174 = vmatpush.msra.mxu3 %v83_v34  ;;  %155 = vmatpush.msra.mxu2 %v66_v36  ;;  %v46_v57 = vld [vmem:[%s660_s1 + $0x90] sm:$0xff]  ;;  %v29_v58 = vld [vmem:[%s660_s1 + $0x8] sm:$0xff] }
  0x15   :  { %134 = vmatpush.msra.mxu1 %v51_v35  ;;  %115 = vmatpush.msra.mxu0 %v34_v37 }
  0x16   :  { %175 = vmatpush.msra.mxu3 %v82_v38  ;;  %156 = vmatpush.msra.mxu2 %v65_v40 }
  0x17   :  { %135 = vmatpush.msra.mxu1 %v50_v39  ;;  %116 = vmatpush.msra.mxu0 %v33_v41 }
  0x18   :  { %176 = vmatpush.msra.mxu3 %v81_v42  ;;  %157 = vmatpush.msra.mxu2 %v64_v44 }
  0x19   :  { %136 = vmatpush.msra.mxu1 %v49_v43  ;;  %117 = vmatpush.msra.mxu0 %v32_v45 }
  0x1a   :  { %177 = vmatpush.msra.mxu3 %v80_v47  ;;  %158 = vmatpush.msra.mxu2 %v63_v49 }
  0x1b   :  { %137 = vmatpush.msra.mxu1 %v48_v48  ;;  %118 = vmatpush.msra.mxu0 %v31_v50 }
  0x1c   :  { %178 = vmatpush.msra.mxu3 %v79_v52 }
  0x1d   :  { %138 = vmatpush.msra.mxu1 %v47_v53 }
  0x1e   :  { %12 = vsyncpa [#allocation3], 0  ;;  %159 = vmatpush.msra.mxu2 %v62_v51  ;;  %119 = vmatpush.msra.mxu0 %v30_v54  ;;  %v77_v59 = vld [vmem:[%s660_s1 + $0x188] sm:$0xff]  ;;  %v60_v61 = vld [vmem:[%s660_s1 + $0x100] sm:$0xff]  ;;  %s315_s30 = smov [#allocation2]   ;;  %s276_s0 = sshll.u32 %s666_s7, 4  ;;  %s277_s0 = int_to_ptr.hbm [resolvable:$true] %s276_s0 }
  0x1f   :  { %v45_v60 = vld [vmem:[%s660_s1 + $0x88] sm:$0xff]  ;;  %179 = vmatpush.msra.mxu3 %v78_v56  ;;  %139 = vmatpush.msra.mxu1 %v46_v57  ;;  %v28_v62 = vld [vmem:[%s660_s1] sm:$0xff]  ;;  %v100_v63 = vld.sshfl [vmem:[#allocation1 + $0x10] sm:$0xff pattern:$0x73625140]  ;;  %s274_s8 = sshll.u32 %s315_s30, 4  ;;  %s275_s8 = int_to_ptr.vmem [resolvable:$true] %s274_s8 }
  0x20   :  { %160 = vmatpush.msra.mxu2 %v61_v55  ;;  %120 = vmatpush.msra.mxu0 %v29_v58  ;;  %v76_v0 = vld [vmem:[%s660_s1 + $0x180] sm:$0xff]  ;;  %v101_v2 = vld.sshfl [vmem:[#allocation1 + $0x18] sm:$0xff pattern:$0x73625140]  ;;  %v201_v6 = vld [vmem:[%s662_s3 + $0x70] sm:$0xff] }
  0x21   :  { %180 = vmatpush.msra.mxu3 %v77_v59  ;;  %140 = vmatpush.msra.mxu1 %v45_v60  ;;  %v98_v1 = vld.sshfl [vmem:[#allocation1] sm:$0xff pattern:$0x73625140]  ;;  %v202_v4 = vld [vmem:[%s662_s3 + $0x78] sm:$0xff]  ;;  %v200_v7 = vld [vmem:[%s662_s3 + $0x68] sm:$0xff] }
  0x22   :  { %161 = vmatpush.msra.mxu2 %v60_v61  ;;  %121 = vmatpush.msra.mxu0 %v28_v62  ;;  %v44_v3 = vld [vmem:[%s660_s1 + $0x80] sm:$0xff]  ;;  %v99_v5 = vld.sshfl [vmem:[#allocation1 + $0x8] sm:$0xff pattern:$0x73625140]  ;;  %v198_v9 = vld [vmem:[%s662_s3 + $0x58] sm:$0xff] }
  0x23   :  { %162 = vmatmul.f32.vlgmr.msra.gmra.mxu2 %v100_v63  ;;  %181 = vmatpush.msra.mxu3 %v76_v0  ;;  %v199_v8 = vld [vmem:[%s662_s3 + $0x60] sm:$0xff]  ;;  %v197_v10 = vld [vmem:[%s662_s3 + $0x50] sm:$0xff]  ;;  %v196_v11 = vld [vmem:[%s662_s3 + $0x48] sm:$0xff] }
  0x24   :  { %122 = vmatmul.f32.vlgmr.msra.gmra.mxu0 %v98_v1  ;;  %182 = vmatmul.f32.vlgmr.msra.gmra.mxu3 %v101_v2  ;;  %v195_v12 = vld [vmem:[%s662_s3 + $0x40] sm:$0xff]  ;;  %v194_v13 = vld [vmem:[%s662_s3 + $0x38] sm:$0xff]  ;;  %v193_v14 = vld [vmem:[%s662_s3 + $0x30] sm:$0xff] }
  0x25   :  { %141 = vmatpush.msra.mxu1 %v44_v3  ;;  %207 = vmatpush.msrb.mxu0 %v202_v4  ;;  %v192_v15 = vld [vmem:[%s662_s3 + $0x28] sm:$0xff]  ;;  %v191_v16 = vld [vmem:[%s662_s3 + $0x20] sm:$0xff]  ;;  %v190_v17 = vld [vmem:[%s662_s3 + $0x18] sm:$0xff] }
  0x26   :  { %142 = vmatmul.f32.vlgmr.msra.gmra.mxu1 %v99_v5  ;;  %v189_v18 = vld [vmem:[%s662_s3 + $0x10] sm:$0xff]  ;;  %v188_v19 = vld [vmem:[%s662_s3 + $0x8] sm:$0xff]  ;;  %v187_v20 = vld [vmem:[%s662_s3] sm:$0xff] }
  0x27   :  { %208 = vmatpush.msrb.mxu0 %v201_v6  ;;  %v243_v21 = vld [vmem:[%s664_s5 + $0x78] sm:$0xff]  ;;  %v242_v22 = vld [vmem:[%s664_s5 + $0x70] sm:$0xff]  ;;  %v241_v23 = vld [vmem:[%s664_s5 + $0x68] sm:$0xff] }
  0x28   :  { %248 = vmatpush.msrb.mxu1 %v243_v21  ;;  %v240_v24 = vld [vmem:[%s664_s5 + $0x60] sm:$0xff]  ;;  %v239_v25 = vld [vmem:[%s664_s5 + $0x58] sm:$0xff]  ;;  %v238_v26 = vld [vmem:[%s664_s5 + $0x50] sm:$0xff] }
  0x29   :  { %209 = vmatpush.msrb.mxu0 %v200_v7  ;;  %v237_v27 = vld [vmem:[%s664_s5 + $0x48] sm:$0xff]  ;;  %v236_v28 = vld [vmem:[%s664_s5 + $0x40] sm:$0xff]  ;;  %v235_v29 = vld [vmem:[%s664_s5 + $0x38] sm:$0xff] }
  0x2a   :  { %249 = vmatpush.msrb.mxu1 %v242_v22  ;;  %v234_v30 = vld [vmem:[%s664_s5 + $0x30] sm:$0xff]  ;;  %v286_v31 = vld [vmem:[%s661_s2] ss:$0 sm:$0xff]  ;;  %v233_v32 = vld [vmem:[%s664_s5 + $0x28] sm:$0xff] }
  0x2b   :  { %210 = vmatpush.msrb.mxu0 %v199_v8  ;;  %v232_v34 = vld [vmem:[%s664_s5 + $0x20] sm:$0xff]  ;;  %v231_v37 = vld [vmem:[%s664_s5 + $0x18] sm:$0xff]  ;;  %v230_v44 = vld [vmem:[%s664_s5 + $0x10] sm:$0xff] }
  0x2c   :  { %250 = vmatpush.msrb.mxu1 %v241_v23  ;;  %v229_v45 = vld [vmem:[%s664_s5 + $0x8] sm:$0xff]  ;;  %v228_v46 = vld [vmem:[%s664_s5] sm:$0xff] }
  0x2d   :  { %211 = vmatpush.msrb.mxu0 %v198_v9  ;;  %v287_v47 = vld [vmem:[%s663_s4] ss:$0 sm:$0xff] }
  0x2e   :  { %251 = vmatpush.msrb.mxu1 %v240_v24  ;;  %v288_v51 = vld [vmem:[%s665_s6] ss:$0 sm:$0xff] }
  0x2f   :  { %212 = vmatpush.msrb.mxu0 %v197_v10 }
  0x30   :  { %252 = vmatpush.msrb.mxu1 %v239_v25 }
  0x31   :  { %213 = vmatpush.msrb.mxu0 %v196_v11 }
  0x32   :  { %253 = vmatpush.msrb.mxu1 %v238_v26 }
  0x33   :  { %214 = vmatpush.msrb.mxu0 %v195_v12 }
  0x34   :  { %254 = vmatpush.msrb.mxu1 %v237_v27 }
  0x35   :  { %215 = vmatpush.msrb.mxu0 %v194_v13 }
  0x36   :  { %255 = vmatpush.msrb.mxu1 %v236_v28 }
  0x37   :  { %216 = vmatpush.msrb.mxu0 %v193_v14 }
  0x38   :  { %256 = vmatpush.msrb.mxu1 %v235_v29 }
  0x39   :  { %217 = vmatpush.msrb.mxu0 %v192_v15 }
  0x3a   :  { %257 = vmatpush.msrb.mxu1 %v234_v30 }
  0x3b   :  { %218 = vmatpush.msrb.mxu0 %v191_v16 }
  0x3c   :  { %258 = vmatpush.msrb.mxu1 %v233_v32 }
  0x3d   :  { %219 = vmatpush.msrb.mxu0 %v190_v17 }
  0x3e   :  { %259 = vmatpush.msrb.mxu1 %v232_v34 }
  0x3f   :  { %220 = vmatpush.msrb.mxu0 %v189_v18 }
  0x40   :  { %260 = vmatpush.msrb.mxu1 %v231_v37 }
  0x41   :  { %221 = vmatpush.msrb.mxu0 %v188_v19 }
  0x42   :  { %261 = vmatpush.msrb.mxu1 %v230_v44 }
  0x43   :  { %222 = vmatpush.msrb.mxu0 %v187_v20 }
  0x44   :  { %262 = vmatpush.msrb.mxu1 %v229_v45 }
  0x46   :  { %263 = vmatpush.msrb.mxu1 %v228_v46 }
  0xa1   :  { %v123_v33 = vpop.f32.mrf.mxu0 }
  0xa2   :  { %v124_v35 = vadd.f32 %v286_v31, %v123_v33 }
  0xa3   :  { %v143_v36 = vpop.f32.mrf.mxu1 }
  0xa4   :  { %v144_v38 = vadd.f32 %v143_v36, %v124_v35 }
  0xa6   :  { %v163_v39 = vpop.f32.mrf.mxu2 }
  0xa7   :  { %v164_v40 = vadd.f32 %v163_v39, %v144_v38  ;;  %v183_v41 = vpop.f32.mrf.mxu3 }
  0xa9   :  { %v184_v42 = vadd.f32 %v183_v41, %v164_v40 }
  0xab   :  { %v186_v43 = vmax.f32 %v184_v42, 0.0 }
  0xad   :  { %223 = vmatmul.f32.vlgmr.msrb.gmra.mxu0 %v186_v43 }
 0x12a   :  { %v224_v48 = vpop.f32.mrf.mxu0 }
 0x12b   :  { %v225_v49 = vadd.f32 %v287_v47, %v224_v48 }
 0x12d   :  { %v227_v50 = vmax.f32 %v225_v49, 0.0 }
 0x12f   :  { %264 = vmatmul.f32.vlgmr.msrb.gmra.mxu1 %v227_v50 }
 0x1ac   :  { %v265_v52 = vpop.f32.mrf.mxu1 }
 0x1ad   :  { %v266_v53 = vadd.f32 %v288_v51, %v265_v52 }
 0x1af   :  { %268 = vst [vmem:[#allocation2] sm:$0x3] %v266_v53 }
 0x1b0   :  { %279 = dma.vmem_to_hbm [thread:$0]  %s275_s8, 32, %s277_s0, [#allocation3]  }
 0x1b1   :  { %313 = dma.done.wait [#allocation3], 32  }
 0x1b2   :  { %314 = vsyncadd [#allocation3], 4294967264 }
 0x1b3   :  { %284 = vsyncpa [#allocation3], 1 }

</bundles_post_ra>
